<compile_context>
chip_gen: v6e
topology: v6e:2x2x1
jax: 0.10.0
libtpu: 0.0.40
codegen_flags: <defaults>
</compile_context>

<pallas_src>
import functools
import numpy as np
import jax
import jax.numpy as jnp
from jax.experimental import pallas as pl
from jax.experimental.pallas import tpu as pltpu

SELU_ALPHA = 1.6732632423543772
SELU_SCALE = 1.0507009873554805
LANE = 128

_WEIGHT_ORDER = (
    "wa0s", "wa0o", "ba0", "wa1", "ba1", "wa2", "ba2", "wa3", "ba3",
    "wc0s", "wc0o", "bc0", "wc1", "bc1", "wc2", "bc2", "wc3", "cb3",
    "log_std",
)


def _selu(x):
    # torch.nn.SELU semantics
    return SELU_SCALE * jnp.where(x > 0, x, SELU_ALPHA * (jnp.exp(x) - 1.0))


def _ceil_to(x, m):
    return ((x + m - 1) // m) * m


# --------------------------------------------------------------------------- kernel
def actor_critic_kernel(
    state_ref, obs_ref, eps_ref,
    wa0s_ref, wa0o_ref, ba0_ref, wa1_ref, ba1_ref, wa2_ref, ba2_ref, wa3_ref, ba3_ref,
    wc0s_ref, wc0o_ref, bc0_ref, wc1_ref, bc1_ref, wc2_ref, bc2_ref, wc3_ref, cb3_ref,
    log_std_ref,
    out_ref,
    *, action_dim,
):
    dot = lambda x, w: jnp.dot(x, w, preferred_element_type=jnp.float32)

    state = state_ref[...]   # (TB, SP) zero-padded proprioceptive features
    obs = obs_ref[...]       # (TB, OP) zero-padded encoder embedding
    eps = eps_ref[...]       # (TB, SW) N(0,1) noise, zero beyond action_dim

    # ---- actor MLP: first layer split along K (no concat), state_enc folded in
    h = _selu(dot(state, wa0s_ref[...]) + dot(obs, wa0o_ref[...]) + ba0_ref[...])
    h = _selu(dot(h, wa1_ref[...]) + ba1_ref[...])
    h = _selu(dot(h, wa2_ref[...]) + ba2_ref[...])
    mean = dot(h, wa3_ref[...]) + ba3_ref[...]           # (TB, SW), zero beyond A

    # ---- critic MLP
    c = _selu(dot(state, wc0s_ref[...]) + dot(obs, wc0o_ref[...]) + bc0_ref[...])
    c = _selu(dot(c, wc1_ref[...]) + bc1_ref[...])
    c = _selu(dot(c, wc2_ref[...]) + bc2_ref[...])
    # N=1 head as VPU multiply + cross-lane reduce instead of a lane-sparse MXU matmul.
    value = jnp.sum(c * wc3_ref[...], axis=1, keepdims=True) + cb3_ref[...]   # (TB, 1)

    # ---- MultivariateNormal(mean, scale_tril=diag(std*std)) sample + log_prob.
    # (reproduces the PyTorch scale_tril = diag(std^2) semantics verbatim)
    log_std = log_std_ref[...]                 # (1, SW), zero-padded
    tril = jnp.exp(2.0 * log_std)              # std * std
    actions = mean + eps * tril                # padded lanes: 0 + 0*1 = 0

    # z = (actions - mean)/tril == eps exactly; padded lanes of eps / log_std are
    # zero so full-width reductions are exact.
    A = action_dim
    logp_const = -jnp.sum(2.0 * log_std) - 0.5 * A * np.log(2.0 * np.pi)
    logp = -0.5 * jnp.sum(eps * eps, axis=1, keepdims=True) + logp_const      # (TB, 1)

    # ---- lane-dense output slab: [actions 0:A | mean A:2A | logp | value | 0...]
    mean_shift = pltpu.roll(mean, shift=A, axis=1)        # XLU rotate; wraps zeros
    lane = jax.lax.broadcasted_iota(jnp.int32, mean.shape, 1)
    slab = actions + mean_shift
    slab = slab + jnp.where(lane == 2 * A, logp, 0.0)
    slab = slab + jnp.where(lane == 2 * A + 1, value, 0.0)
    out_ref[...] = slab


# ---------------------------------------------------------------------- parameters
def _orthogonal(key, out_dim, in_dim, gain):
    # torch.nn.init.orthogonal_ on an (out, in) weight, deterministic via key.
    rows, cols = out_dim, in_dim
    big, small = max(rows, cols), min(rows, cols)
    a = jax.random.normal(key, (big, small), dtype=jnp.float32)
    q, r = jnp.linalg.qr(a)
    d = jnp.diagonal(r)
    q = q * jnp.where(d >= 0, 1.0, -1.0)[None, :]   # robust sign (avoids sign(0)=0)
    if rows < cols:
        q = q.T
    return (gain * q[:rows, :cols]).astype(jnp.float32)


def make_params(key, prop_dim, emb_dim, actor_hidden, critic_hidden, action_dim, initial_std):
    joint_dim = 3 * emb_dim
    keys = jax.random.split(key, 16)
    k = iter(keys)

    params = {}
    params["ws"] = (jax.random.normal(next(k), (prop_dim, emb_dim), jnp.float32)
                    / np.sqrt(prop_dim))
    params["bs"] = jnp.zeros((1, emb_dim), jnp.float32)

    a_dims = [joint_dim] + list(actor_hidden) + [action_dim]
    a_gains = [np.sqrt(2.0)] * len(actor_hidden) + [0.01]
    for i in range(4):
        w = _orthogonal(next(k), a_dims[i + 1], a_dims[i], a_gains[i])  # (out, in)
        params[f"aw{i}"] = w.T                                          # (in, out)
        params[f"ab{i}"] = jnp.zeros((1, a_dims[i + 1]), jnp.float32)

    c_dims = [joint_dim] + list(critic_hidden) + [1]
    c_gains = [np.sqrt(2.0)] * len(critic_hidden) + [1.0]
    for i in range(4):
        w = _orthogonal(next(k), c_dims[i + 1], c_dims[i], c_gains[i])
        params[f"cw{i}"] = w.T
        params[f"cb{i}"] = jnp.zeros((1, c_dims[i + 1]), jnp.float32)

    params["log_std"] = jnp.full((1, action_dim), np.log(initial_std), jnp.float32)
    return params


def _pad2(w, rows, cols):
    w = np.asarray(w, np.float32)
    out = np.zeros((rows, cols), np.float32)
    out[: w.shape[0], : w.shape[1]] = w
    return jnp.asarray(out)


def prepare_kernel_params(params):
    """Offline: fold state_enc into the first-layer state branch (f64 on host),
    split the first layer along K, zero-pad everything to multiples of 128."""
    ws = np.asarray(params["ws"], np.float64)   # (prop, emb)
    bs = np.asarray(params["bs"], np.float64)   # (1, emb)
    prop_dim, emb_dim = ws.shape

    aw0 = np.asarray(params["aw0"], np.float64)
    cw0 = np.asarray(params["cw0"], np.float64)
    obs_dim = aw0.shape[0] - emb_dim
    h0a, h1a, h2a = aw0.shape[1], params["aw1"].shape[1], params["aw2"].shape[1]
    h0c, h1c, h2c = cw0.shape[1], params["cw1"].shape[1], params["cw2"].shape[1]
    A = params["aw3"].shape[1]

    SP = _ceil_to(prop_dim, LANE)
    OP = _ceil_to(obs_dim, LANE)
    HA0, HA1, HA2 = (_ceil_to(h, LANE) for h in (h0a, h1a, h2a))
    HC0, HC1, HC2 = (_ceil_to(h, LANE) for h in (h0c, h1c, h2c))
    SW = _ceil_to(2 * A + 2, LANE)   # slab width: actions | mean | logp | value

    aw0_s, aw0_o = aw0[:emb_dim], aw0[emb_dim:]
    cw0_s, cw0_o = cw0[:emb_dim], cw0[emb_dim:]

    kp = {
        # actor
        "wa0s": _pad2(ws @ aw0_s, SP, HA0),                                   # folded
        "wa0o": _pad2(aw0_o, OP, HA0),
        "ba0": _pad2(np.asarray(params["ab0"], np.float64) + bs @ aw0_s, 1, HA0),
        "wa1": _pad2(params["aw1"], HA0, HA1),
        "ba1": _pad2(params["ab1"], 1, HA1),
        "wa2": _pad2(params["aw2"], HA1, HA2),
        "ba2": _pad2(params["ab2"], 1, HA2),
        "wa3": _pad2(params["aw3"], HA2, SW),
        "ba3": _pad2(params["ab3"], 1, SW),
        # critic
        "wc0s": _pad2(ws @ cw0_s, SP, HC0),                                   # folded
        "wc0o": _pad2(cw0_o, OP, HC0),
        "bc0": _pad2(np.asarray(params["cb0"], np.float64) + bs @ cw0_s, 1, HC0),
        "wc1": _pad2(params["cw1"], HC0, HC1),
        "bc1": _pad2(params["cb1"], 1, HC1),
        "wc2": _pad2(params["cw2"], HC1, HC2),
        "bc2": _pad2(params["cb2"], 1, HC2),
        "wc3": _pad2(np.asarray(params["cw3"], np.float32).T, 1, HC2),        # row vec
        "cb3": jnp.asarray(np.asarray(params["cb3"], np.float32).reshape(1, 1)),
        "log_std": _pad2(params["log_std"], 1, SW),
    }
    return kp


# ------------------------------------------------------------------------- wrapper
def actor_critic_act(state, obs_emb, eps, kp, action_dim, max_batch_tile=256):
    B = state.shape[0]
    A = action_dim
    SP = kp["wa0s"].shape[0]
    OP = kp["wa0o"].shape[0]
    SW = kp["wa3"].shape[1]
    assert state.shape[1] <= SP and obs_emb.shape[1] <= OP and eps.shape[1] == A
    assert 2 * A + 2 <= SW

    TB = min(max_batch_tile, _ceil_to(B, 8))   # batch tile, multiple of 8
    Bp = _ceil_to(B, TB)

    def pad_in(x, cols):
        out = jnp.zeros((Bp, cols), jnp.float32)
        return out.at[: x.shape[0], : x.shape[1]].set(x.astype(jnp.float32))

    state_p = pad_in(state, SP)
    obs_p = pad_in(obs_emb, OP)
    eps_p = pad_in(eps, SW)

    weights = [kp[name] for name in _WEIGHT_ORDER]

    stream = lambda cols: pl.BlockSpec((TB, cols), lambda i: (i, 0))
    resident = lambda w: pl.BlockSpec(w.shape, lambda i: (0, 0))   # weights stay put

    slab = pl.pallas_call(
        functools.partial(actor_critic_kernel, action_dim=A),
        out_shape=jax.ShapeDtypeStruct((Bp, SW), jnp.float32),
        grid=(Bp // TB,),
        in_specs=[stream(SP), stream(OP), stream(SW)] + [resident(w) for w in weights],
        out_specs=pl.BlockSpec((TB, SW), lambda i: (i, 0)),
        compiler_params=pltpu.CompilerParams(
            dimension_semantics=("parallel",),   # shards batch tiles across TCs (v7x)
            vmem_limit_bytes=8 << 20,            # well under v7x's 64 MiB physical VMEM
        ),
    )(state_p, obs_p, eps_p, *weights)

    slab = slab[:B]
    actions = slab[:, :A]
    mean = slab[:, A:2 * A]
    logp = slab[:, 2 * A:2 * A + 1]
    value = slab[:, 2 * A + 1:2 * A + 2]
    return actions, logp, value, mean


# ---------------------------------------------------------------------------- main
if __name__ == "__main__":
    B = 8            # batch
    PROP_DIM = 16    # env_cfg['obs_dim']['prop']
    EMB_DIM = 32     # encoder emb_dim; obs_enc output is 2*EMB_DIM (3 obs types)
    HIDDEN = [64, 64, 64]
    ACTION_DIM = 8
    INITIAL_STD = 0.8

    root = jax.random.PRNGKey(0)
    k_param, k_state, k_obs, k_eps = jax.random.split(root, 4)

    params = make_params(k_param, PROP_DIM, EMB_DIM, HIDDEN, HIDDEN, ACTION_DIM, INITIAL_STD)
    kparams = prepare_kernel_params(params)

    state = jax.random.normal(k_state, (B, PROP_DIM), jnp.float32)      # proprioceptive obs
    obs_emb = jax.random.normal(k_obs, (B, 2 * EMB_DIM), jnp.float32)   # visual+tactile emb
    eps = jax.random.normal(k_eps, (B, ACTION_DIM), jnp.float32)        # sampling noise

    actions, logp, value, mean = actor_critic_act(state, obs_emb, eps, kparams, ACTION_DIM)
    jax.block_until_ready((actions, logp, value, mean))

    # ---- pure-JAX reference of the original (unfolded, concat-based) math
    se = state @ params["ws"] + params["bs"]
    joint = jnp.concatenate([se, obs_emb], axis=1)
    h = joint
    for i in range(3):
        h = _selu(h @ params[f"aw{i}"] + params[f"ab{i}"])
    mean_ref = h @ params["aw3"] + params["ab3"]
    c = joint
    for i in range(3):
        c = _selu(c @ params[f"cw{i}"] + params[f"cb{i}"])
    value_ref = c @ params["cw3"] + params["cb3"]
    diag = jnp.exp(params["log_std"]) ** 2
    actions_ref = mean_ref + eps * diag
    z = (actions_ref - mean_ref) / diag
    logp_ref = (-0.5 * jnp.sum(z * z, axis=1, keepdims=True)
                - jnp.sum(jnp.log(diag), axis=1, keepdims=True)
                - 0.5 * ACTION_DIM * jnp.log(2.0 * jnp.pi))

    assert np.allclose(np.asarray(mean), np.asarray(mean_ref), rtol=5e-4, atol=5e-4)
    assert np.allclose(np.asarray(value), np.asarray(value_ref), rtol=5e-4, atol=5e-4)
    assert np.allclose(np.asarray(actions), np.asarray(actions_ref), rtol=5e-4, atol=5e-4)
    assert np.allclose(np.asarray(logp), np.asarray(logp_ref), rtol=5e-4, atol=5e-4)

    print("KERNEL_OK")
</pallas_src>

<mosaic_0001>
module attributes {stable_mosaic.version = 11 : i64} {
  func.func @actor_critic_kernel(%arg0: i32, %arg1: memref<8x128xf32, #tpu.memory_space<vmem>>, %arg2: memref<8x128xf32, #tpu.memory_space<vmem>>, %arg3: memref<8x128xf32, #tpu.memory_space<vmem>>, %arg4: memref<128x128xf32, #tpu.memory_space<vmem>>, %arg5: memref<128x128xf32, #tpu.memory_space<vmem>>, %arg6: memref<1x128xf32, #tpu.memory_space<vmem>>, %arg7: memref<128x128xf32, #tpu.memory_space<vmem>>, %arg8: memref<1x128xf32, #tpu.memory_space<vmem>>, %arg9: memref<128x128xf32, #tpu.memory_space<vmem>>, %arg10: memref<1x128xf32, #tpu.memory_space<vmem>>, %arg11: memref<128x128xf32, #tpu.memory_space<vmem>>, %arg12: memref<1x128xf32, #tpu.memory_space<vmem>>, %arg13: memref<128x128xf32, #tpu.memory_space<vmem>>, %arg14: memref<128x128xf32, #tpu.memory_space<vmem>>, %arg15: memref<1x128xf32, #tpu.memory_space<vmem>>, %arg16: memref<128x128xf32, #tpu.memory_space<vmem>>, %arg17: memref<1x128xf32, #tpu.memory_space<vmem>>, %arg18: memref<128x128xf32, #tpu.memory_space<vmem>>, %arg19: memref<1x128xf32, #tpu.memory_space<vmem>>, %arg20: memref<1x128xf32, #tpu.memory_space<vmem>>, %arg21: memref<1x1xf32, #tpu.memory_space<vmem>>, %arg22: memref<1x128xf32, #tpu.memory_space<vmem>>, %arg23: memref<8x128xf32, #tpu.memory_space<vmem>>) attributes {dimension_semantics = [#tpu.dimension_semantics<parallel>], iteration_bounds = array<i64: 1>, scalar_prefetch = 0 : i64, scratch_operands = 0 : i64, tpu.core_type = #tpu.core_type<tc>, window_params = [{transform_indices = @transform_0, window_bounds = array<i64: 8, 128>}, {transform_indices = @transform_1, window_bounds = array<i64: 8, 128>}, {transform_indices = @transform_2, window_bounds = array<i64: 8, 128>}, {pipeline_mode = #tpu.pipeline_mode<synchronous>, transform_indices = @transform_3, window_bounds = array<i64: 128, 128>}, {pipeline_mode = #tpu.pipeline_mode<synchronous>, transform_indices = @transform_4, window_bounds = array<i64: 128, 128>}, {pipeline_mode = #tpu.pipeline_mode<synchronous>, transform_indices = @transform_5, window_bounds = array<i64: 1, 128>}, {pipeline_mode = #tpu.pipeline_mode<synchronous>, transform_indices = @transform_6, window_bounds = array<i64: 128, 128>}, {pipeline_mode = #tpu.pipeline_mode<synchronous>, transform_indices = @transform_7, window_bounds = array<i64: 1, 128>}, {pipeline_mode = #tpu.pipeline_mode<synchronous>, transform_indices = @transform_8, window_bounds = array<i64: 128, 128>}, {pipeline_mode = #tpu.pipeline_mode<synchronous>, transform_indices = @transform_9, window_bounds = array<i64: 1, 128>}, {pipeline_mode = #tpu.pipeline_mode<synchronous>, transform_indices = @transform_10, window_bounds = array<i64: 128, 128>}, {pipeline_mode = #tpu.pipeline_mode<synchronous>, transform_indices = @transform_11, window_bounds = array<i64: 1, 128>}, {pipeline_mode = #tpu.pipeline_mode<synchronous>, transform_indices = @transform_12, window_bounds = array<i64: 128, 128>}, {pipeline_mode = #tpu.pipeline_mode<synchronous>, transform_indices = @transform_13, window_bounds = array<i64: 128, 128>}, {pipeline_mode = #tpu.pipeline_mode<synchronous>, transform_indices = @transform_14, window_bounds = array<i64: 1, 128>}, {pipeline_mode = #tpu.pipeline_mode<synchronous>, transform_indices = @transform_15, window_bounds = array<i64: 128, 128>}, {pipeline_mode = #tpu.pipeline_mode<synchronous>, transform_indices = @transform_16, window_bounds = array<i64: 1, 128>}, {pipeline_mode = #tpu.pipeline_mode<synchronous>, transform_indices = @transform_17, window_bounds = array<i64: 128, 128>}, {pipeline_mode = #tpu.pipeline_mode<synchronous>, transform_indices = @transform_18, window_bounds = array<i64: 1, 128>}, {pipeline_mode = #tpu.pipeline_mode<synchronous>, transform_indices = @transform_19, window_bounds = array<i64: 1, 128>}, {pipeline_mode = #tpu.pipeline_mode<synchronous>, transform_indices = @transform_20, window_bounds = array<i64: 1, 1>}, {pipeline_mode = #tpu.pipeline_mode<synchronous>, transform_indices = @transform_21, window_bounds = array<i64: 1, 128>}, {transform_indices = @transform_22, window_bounds = array<i64: 8, 128>}]} {
    %c0 = arith.constant 0 : index
    %c0_0 = arith.constant 0 : index
    %0 = vector.load %arg1[%c0, %c0_0] : memref<8x128xf32, #tpu.memory_space<vmem>>, vector<8x128xf32>
    %c0_1 = arith.constant 0 : index
    %c0_2 = arith.constant 0 : index
    %1 = vector.load %arg2[%c0_1, %c0_2] : memref<8x128xf32, #tpu.memory_space<vmem>>, vector<8x128xf32>
    %c0_3 = arith.constant 0 : index
    %c0_4 = arith.constant 0 : index
    %2 = vector.load %arg3[%c0_3, %c0_4] : memref<8x128xf32, #tpu.memory_space<vmem>>, vector<8x128xf32>
    %c0_5 = arith.constant 0 : index
    %c0_6 = arith.constant 0 : index
    %3 = vector.load %arg4[%c0_5, %c0_6] : memref<128x128xf32, #tpu.memory_space<vmem>>, vector<128x128xf32>
    %cst = arith.constant dense<0.000000e+00> : vector<8x128xf32>
    %4 = tpu.matmul %0, %3, %cst {dimension_numbers = #tpu.dot_dimension_numbers<[1], [0], [0], [1], [0, 0, 1, 1], [], []>} : vector<8x128xf32>, vector<128x128xf32>, vector<8x128xf32> -> vector<8x128xf32>
    %c0_7 = arith.constant 0 : index
    %c0_8 = arith.constant 0 : index
    %5 = vector.load %arg5[%c0_7, %c0_8] : memref<128x128xf32, #tpu.memory_space<vmem>>, vector<128x128xf32>
    %cst_9 = arith.constant dense<0.000000e+00> : vector<8x128xf32>
    %6 = tpu.matmul %1, %5, %cst_9 {dimension_numbers = #tpu.dot_dimension_numbers<[1], [0], [0], [1], [0, 0, 1, 1], [], []>} : vector<8x128xf32>, vector<128x128xf32>, vector<8x128xf32> -> vector<8x128xf32>
    %7 = arith.addf %4, %6 : vector<8x128xf32>
    %c0_10 = arith.constant 0 : index
    %c0_11 = arith.constant 0 : index
    %8 = vector.load %arg6[%c0_10, %c0_11] : memref<1x128xf32, #tpu.memory_space<vmem>>, vector<1x128xf32>
    %9 = vector.broadcast %8 : vector<1x128xf32> to vector<8x128xf32>
    %10 = arith.addf %7, %9 : vector<8x128xf32>
    %cst_12 = arith.constant 0.000000e+00 : f32
    %11 = vector.broadcast %cst_12 : f32 to vector<8x128xf32>
    %12 = arith.cmpf ogt, %10, %11 : vector<8x128xf32>
    %13 = math.exp %10 : vector<8x128xf32>
    %cst_13 = arith.constant 1.000000e+00 : f32
    %14 = vector.broadcast %cst_13 : f32 to vector<8x128xf32>
    %15 = arith.subf %13, %14 : vector<8x128xf32>
    %cst_14 = arith.constant 1.67326319 : f32
    %16 = vector.broadcast %cst_14 : f32 to vector<8x128xf32>
    %17 = arith.mulf %16, %15 : vector<8x128xf32>
    %18 = arith.select %12, %10, %17 : vector<8x128xi1>, vector<8x128xf32>
    %cst_15 = arith.constant 1.05070102 : f32
    %19 = vector.broadcast %cst_15 : f32 to vector<8x128xf32>
    %20 = arith.mulf %19, %18 : vector<8x128xf32>
    %c0_16 = arith.constant 0 : index
    %c0_17 = arith.constant 0 : index
    %21 = vector.load %arg7[%c0_16, %c0_17] : memref<128x128xf32, #tpu.memory_space<vmem>>, vector<128x128xf32>
    %cst_18 = arith.constant dense<0.000000e+00> : vector<8x128xf32>
    %22 = tpu.matmul %20, %21, %cst_18 {dimension_numbers = #tpu.dot_dimension_numbers<[1], [0], [0], [1], [0, 0, 1, 1], [], []>} : vector<8x128xf32>, vector<128x128xf32>, vector<8x128xf32> -> vector<8x128xf32>
    %c0_19 = arith.constant 0 : index
    %c0_20 = arith.constant 0 : index
    %23 = vector.load %arg8[%c0_19, %c0_20] : memref<1x128xf32, #tpu.memory_space<vmem>>, vector<1x128xf32>
    %24 = vector.broadcast %23 : vector<1x128xf32> to vector<8x128xf32>
    %25 = arith.addf %22, %24 : vector<8x128xf32>
    %cst_21 = arith.constant 0.000000e+00 : f32
    %26 = vector.broadcast %cst_21 : f32 to vector<8x128xf32>
    %27 = arith.cmpf ogt, %25, %26 : vector<8x128xf32>
    %28 = math.exp %25 : vector<8x128xf32>
    %cst_22 = arith.constant 1.000000e+00 : f32
    %29 = vector.broadcast %cst_22 : f32 to vector<8x128xf32>
    %30 = arith.subf %28, %29 : vector<8x128xf32>
    %cst_23 = arith.constant 1.67326319 : f32
    %31 = vector.broadcast %cst_23 : f32 to vector<8x128xf32>
    %32 = arith.mulf %31, %30 : vector<8x128xf32>
    %33 = arith.select %27, %25, %32 : vector<8x128xi1>, vector<8x128xf32>
    %cst_24 = arith.constant 1.05070102 : f32
    %34 = vector.broadcast %cst_24 : f32 to vector<8x128xf32>
    %35 = arith.mulf %34, %33 : vector<8x128xf32>
    %c0_25 = arith.constant 0 : index
    %c0_26 = arith.constant 0 : index
    %36 = vector.load %arg9[%c0_25, %c0_26] : memref<128x128xf32, #tpu.memory_space<vmem>>, vector<128x128xf32>
    %cst_27 = arith.constant dense<0.000000e+00> : vector<8x128xf32>
    %37 = tpu.matmul %35, %36, %cst_27 {dimension_numbers = #tpu.dot_dimension_numbers<[1], [0], [0], [1], [0, 0, 1, 1], [], []>} : vector<8x128xf32>, vector<128x128xf32>, vector<8x128xf32> -> vector<8x128xf32>
    %c0_28 = arith.constant 0 : index
    %c0_29 = arith.constant 0 : index
    %38 = vector.load %arg10[%c0_28, %c0_29] : memref<1x128xf32, #tpu.memory_space<vmem>>, vector<1x128xf32>
    %39 = vector.broadcast %38 : vector<1x128xf32> to vector<8x128xf32>
    %40 = arith.addf %37, %39 : vector<8x128xf32>
    %cst_30 = arith.constant 0.000000e+00 : f32
    %41 = vector.broadcast %cst_30 : f32 to vector<8x128xf32>
    %42 = arith.cmpf ogt, %40, %41 : vector<8x128xf32>
    %43 = math.exp %40 : vector<8x128xf32>
    %cst_31 = arith.constant 1.000000e+00 : f32
    %44 = vector.broadcast %cst_31 : f32 to vector<8x128xf32>
    %45 = arith.subf %43, %44 : vector<8x128xf32>
    %cst_32 = arith.constant 1.67326319 : f32
    %46 = vector.broadcast %cst_32 : f32 to vector<8x128xf32>
    %47 = arith.mulf %46, %45 : vector<8x128xf32>
    %48 = arith.select %42, %40, %47 : vector<8x128xi1>, vector<8x128xf32>
    %cst_33 = arith.constant 1.05070102 : f32
    %49 = vector.broadcast %cst_33 : f32 to vector<8x128xf32>
    %50 = arith.mulf %49, %48 : vector<8x128xf32>
    %c0_34 = arith.constant 0 : index
    %c0_35 = arith.constant 0 : index
    %51 = vector.load %arg11[%c0_34, %c0_35] : memref<128x128xf32, #tpu.memory_space<vmem>>, vector<128x128xf32>
    %cst_36 = arith.constant dense<0.000000e+00> : vector<8x128xf32>
    %52 = tpu.matmul %50, %51, %cst_36 {dimension_numbers = #tpu.dot_dimension_numbers<[1], [0], [0], [1], [0, 0, 1, 1], [], []>} : vector<8x128xf32>, vector<128x128xf32>, vector<8x128xf32> -> vector<8x128xf32>
    %c0_37 = arith.constant 0 : index
    %c0_38 = arith.constant 0 : index
    %53 = vector.load %arg12[%c0_37, %c0_38] : memref<1x128xf32, #tpu.memory_space<vmem>>, vector<1x128xf32>
    %54 = vector.broadcast %53 : vector<1x128xf32> to vector<8x128xf32>
    %55 = arith.addf %52, %54 : vector<8x128xf32>
    %c0_39 = arith.constant 0 : index
    %c0_40 = arith.constant 0 : index
    %56 = vector.load %arg13[%c0_39, %c0_40] : memref<128x128xf32, #tpu.memory_space<vmem>>, vector<128x128xf32>
    %cst_41 = arith.constant dense<0.000000e+00> : vector<8x128xf32>
    %57 = tpu.matmul %0, %56, %cst_41 {dimension_numbers = #tpu.dot_dimension_numbers<[1], [0], [0], [1], [0, 0, 1, 1], [], []>} : vector<8x128xf32>, vector<128x128xf32>, vector<8x128xf32> -> vector<8x128xf32>
    %c0_42 = arith.constant 0 : index
    %c0_43 = arith.constant 0 : index
    %58 = vector.load %arg14[%c0_42, %c0_43] : memref<128x128xf32, #tpu.memory_space<vmem>>, vector<128x128xf32>
    %cst_44 = arith.constant dense<0.000000e+00> : vector<8x128xf32>
    %59 = tpu.matmul %1, %58, %cst_44 {dimension_numbers = #tpu.dot_dimension_numbers<[1], [0], [0], [1], [0, 0, 1, 1], [], []>} : vector<8x128xf32>, vector<128x128xf32>, vector<8x128xf32> -> vector<8x128xf32>
    %60 = arith.addf %57, %59 : vector<8x128xf32>
    %c0_45 = arith.constant 0 : index
    %c0_46 = arith.constant 0 : index
    %61 = vector.load %arg15[%c0_45, %c0_46] : memref<1x128xf32, #tpu.memory_space<vmem>>, vector<1x128xf32>
    %62 = vector.broadcast %61 : vector<1x128xf32> to vector<8x128xf32>
    %63 = arith.addf %60, %62 : vector<8x128xf32>
    %cst_47 = arith.constant 0.000000e+00 : f32
    %64 = vector.broadcast %cst_47 : f32 to vector<8x128xf32>
    %65 = arith.cmpf ogt, %63, %64 : vector<8x128xf32>
    %66 = math.exp %63 : vector<8x128xf32>
    %cst_48 = arith.constant 1.000000e+00 : f32
    %67 = vector.broadcast %cst_48 : f32 to vector<8x128xf32>
    %68 = arith.subf %66, %67 : vector<8x128xf32>
    %cst_49 = arith.constant 1.67326319 : f32
    %69 = vector.broadcast %cst_49 : f32 to vector<8x128xf32>
    %70 = arith.mulf %69, %68 : vector<8x128xf32>
    %71 = arith.select %65, %63, %70 : vector<8x128xi1>, vector<8x128xf32>
    %cst_50 = arith.constant 1.05070102 : f32
    %72 = vector.broadcast %cst_50 : f32 to vector<8x128xf32>
    %73 = arith.mulf %72, %71 : vector<8x128xf32>
    %c0_51 = arith.constant 0 : index
    %c0_52 = arith.constant 0 : index
    %74 = vector.load %arg16[%c0_51, %c0_52] : memref<128x128xf32, #tpu.memory_space<vmem>>, vector<128x128xf32>
    %cst_53 = arith.constant dense<0.000000e+00> : vector<8x128xf32>
    %75 = tpu.matmul %73, %74, %cst_53 {dimension_numbers = #tpu.dot_dimension_numbers<[1], [0], [0], [1], [0, 0, 1, 1], [], []>} : vector<8x128xf32>, vector<128x128xf32>, vector<8x128xf32> -> vector<8x128xf32>
    %c0_54 = arith.constant 0 : index
    %c0_55 = arith.constant 0 : index
    %76 = vector.load %arg17[%c0_54, %c0_55] : memref<1x128xf32, #tpu.memory_space<vmem>>, vector<1x128xf32>
    %77 = vector.broadcast %76 : vector<1x128xf32> to vector<8x128xf32>
    %78 = arith.addf %75, %77 : vector<8x128xf32>
    %cst_56 = arith.constant 0.000000e+00 : f32
    %79 = vector.broadcast %cst_56 : f32 to vector<8x128xf32>
    %80 = arith.cmpf ogt, %78, %79 : vector<8x128xf32>
    %81 = math.exp %78 : vector<8x128xf32>
    %cst_57 = arith.constant 1.000000e+00 : f32
    %82 = vector.broadcast %cst_57 : f32 to vector<8x128xf32>
    %83 = arith.subf %81, %82 : vector<8x128xf32>
    %cst_58 = arith.constant 1.67326319 : f32
    %84 = vector.broadcast %cst_58 : f32 to vector<8x128xf32>
    %85 = arith.mulf %84, %83 : vector<8x128xf32>
    %86 = arith.select %80, %78, %85 : vector<8x128xi1>, vector<8x128xf32>
    %cst_59 = arith.constant 1.05070102 : f32
    %87 = vector.broadcast %cst_59 : f32 to vector<8x128xf32>
    %88 = arith.mulf %87, %86 : vector<8x128xf32>
    %c0_60 = arith.constant 0 : index
    %c0_61 = arith.constant 0 : index
    %89 = vector.load %arg18[%c0_60, %c0_61] : memref<128x128xf32, #tpu.memory_space<vmem>>, vector<128x128xf32>
    %cst_62 = arith.constant dense<0.000000e+00> : vector<8x128xf32>
    %90 = tpu.matmul %88, %89, %cst_62 {dimension_numbers = #tpu.dot_dimension_numbers<[1], [0], [0], [1], [0, 0, 1, 1], [], []>} : vector<8x128xf32>, vector<128x128xf32>, vector<8x128xf32> -> vector<8x128xf32>
    %c0_63 = arith.constant 0 : index
    %c0_64 = arith.constant 0 : index
    %91 = vector.load %arg19[%c0_63, %c0_64] : memref<1x128xf32, #tpu.memory_space<vmem>>, vector<1x128xf32>
    %92 = vector.broadcast %91 : vector<1x128xf32> to vector<8x128xf32>
    %93 = arith.addf %90, %92 : vector<8x128xf32>
    %cst_65 = arith.constant 0.000000e+00 : f32
    %94 = vector.broadcast %cst_65 : f32 to vector<8x128xf32>
    %95 = arith.cmpf ogt, %93, %94 : vector<8x128xf32>
    %96 = math.exp %93 : vector<8x128xf32>
    %cst_66 = arith.constant 1.000000e+00 : f32
    %97 = vector.broadcast %cst_66 : f32 to vector<8x128xf32>
    %98 = arith.subf %96, %97 : vector<8x128xf32>
    %cst_67 = arith.constant 1.67326319 : f32
    %99 = vector.broadcast %cst_67 : f32 to vector<8x128xf32>
    %100 = arith.mulf %99, %98 : vector<8x128xf32>
    %101 = arith.select %95, %93, %100 : vector<8x128xi1>, vector<8x128xf32>
    %cst_68 = arith.constant 1.05070102 : f32
    %102 = vector.broadcast %cst_68 : f32 to vector<8x128xf32>
    %103 = arith.mulf %102, %101 : vector<8x128xf32>
    %c0_69 = arith.constant 0 : index
    %c0_70 = arith.constant 0 : index
    %104 = vector.load %arg20[%c0_69, %c0_70] : memref<1x128xf32, #tpu.memory_space<vmem>>, vector<1x128xf32>
    %105 = vector.broadcast %104 : vector<1x128xf32> to vector<8x128xf32>
    %106 = arith.mulf %103, %105 : vector<8x128xf32>
    %cst_71 = arith.constant dense<0.000000e+00> : vector<8xf32>
    %107 = vector.multi_reduction <add>, %106, %cst_71 [1] : vector<8x128xf32> to vector<8xf32>
    %108 = vector.shape_cast %107 : vector<8xf32> to vector<8x1xf32>
    %c0_72 = arith.constant 0 : index
    %c0_73 = arith.constant 0 : index
    %109 = vector.load %arg21[%c0_72, %c0_73] : memref<1x1xf32, #tpu.memory_space<vmem>>, vector<1x1xf32>
    %110 = vector.broadcast %109 : vector<1x1xf32> to vector<8x1xf32>
    %111 = arith.addf %108, %110 : vector<8x1xf32>
    %c0_74 = arith.constant 0 : index
    %c0_75 = arith.constant 0 : index
    %112 = vector.load %arg22[%c0_74, %c0_75] : memref<1x128xf32, #tpu.memory_space<vmem>>, vector<1x128xf32>
    %cst_76 = arith.constant 2.000000e+00 : f32
    %113 = vector.broadcast %cst_76 : f32 to vector<1x128xf32>
    %114 = arith.mulf %113, %112 : vector<1x128xf32>
    %115 = math.exp %114 : vector<1x128xf32>
    %116 = vector.broadcast %115 : vector<1x128xf32> to vector<8x128xf32>
    %117 = arith.mulf %2, %116 : vector<8x128xf32>
    %118 = arith.addf %55, %117 : vector<8x128xf32>
    %cst_77 = arith.constant 2.000000e+00 : f32
    %119 = vector.broadcast %cst_77 : f32 to vector<1x128xf32>
    %120 = arith.mulf %119, %112 : vector<1x128xf32>
    %121 = vector.shape_cast %120 : vector<1x128xf32> to vector<1x1x128xf32>
    %cst_78 = arith.constant dense<0.000000e+00> : vector<1xf32>
    %122 = vector.multi_reduction <add>, %121, %cst_78 [1, 2] : vector<1x1x128xf32> to vector<1xf32>
    %123 = vector.shape_cast %122 : vector<1xf32> to vector<1x1x1xf32>
    %124 = vector.extract %123[0, 0, 0] : f32 from vector<1x1x1xf32>
    %cst_79 = arith.constant 0.000000e+00 : f32
    %125 = arith.subf %cst_79, %124 : f32
    %cst_80 = arith.constant 7.35150814 : f32
    %126 = arith.subf %125, %cst_80 : f32
    %127 = arith.mulf %2, %2 : vector<8x128xf32>
    %cst_81 = arith.constant dense<0.000000e+00> : vector<8xf32>
    %128 = vector.multi_reduction <add>, %127, %cst_81 [1] : vector<8x128xf32> to vector<8xf32>
    %129 = vector.shape_cast %128 : vector<8xf32> to vector<8x1xf32>
    %cst_82 = arith.constant -5.000000e-01 : f32
    %130 = vector.broadcast %cst_82 : f32 to vector<8x1xf32>
    %131 = arith.mulf %130, %129 : vector<8x1xf32>
    %132 = vector.broadcast %126 : f32 to vector<8x1xf32>
    %133 = arith.addf %131, %132 : vector<8x1xf32>
    %c8_i32 = arith.constant 8 : i32
    %134 = tpu.dynamic_rotate %55 by %c8_i32 dim 1 : vector<8x128xf32>, i32 -> vector<8x128xf32>
    %135 = tpu.iota {dimensions = array<i32: 1>} : vector<8x128xi32>
    %136 = arith.addf %118, %134 : vector<8x128xf32>
    %c16_i32 = arith.constant 16 : i32
    %137 = vector.broadcast %c16_i32 : i32 to vector<8x128xi32>
    %138 = arith.cmpi eq, %135, %137 : vector<8x128xi32>
    %cst_83 = arith.constant 0.000000e+00 : f32
    %139 = vector.shape_cast %133 : vector<8x1xf32> to vector<8x1xf32>
    %140 = vector.broadcast %139 : vector<8x1xf32> to vector<8x128xf32>
    %141 = vector.broadcast %cst_83 : f32 to vector<8x128xf32>
    %142 = arith.select %138, %140, %141 : vector<8x128xi1>, vector<8x128xf32>
    %143 = arith.addf %136, %142 : vector<8x128xf32>
    %c17_i32 = arith.constant 17 : i32
    %144 = vector.broadcast %c17_i32 : i32 to vector<8x128xi32>
    %145 = arith.cmpi eq, %135, %144 : vector<8x128xi32>
    %cst_84 = arith.constant 0.000000e+00 : f32
    %146 = vector.shape_cast %111 : vector<8x1xf32> to vector<8x1xf32>
    %147 = vector.broadcast %146 : vector<8x1xf32> to vector<8x128xf32>
    %148 = vector.broadcast %cst_84 : f32 to vector<8x128xf32>
    %149 = arith.select %145, %147, %148 : vector<8x128xi1>, vector<8x128xf32>
    %150 = arith.addf %143, %149 : vector<8x128xf32>
    %c0_85 = arith.constant 0 : index
    %c0_86 = arith.constant 0 : index
    %151 = vector.load %arg23[%c0_85, %c0_86] : memref<8x128xf32, #tpu.memory_space<vmem>>, vector<8x128xf32>
    tpu.vector_store %arg23[%c0_85, %c0_86], %150 {strides = array<i32>} : memref<8x128xf32, #tpu.memory_space<vmem>>, vector<8x128xf32>,
    return
  }
  func.func @transform_0(%arg0: i32) -> (i32, i32) {
    %c0_i32 = arith.constant 0 : i32
    %c0_i32_0 = arith.constant 0 : i32
    return %arg0, %c0_i32 : i32, i32
  }
  func.func @transform_1(%arg0: i32) -> (i32, i32) {
    %c0_i32 = arith.constant 0 : i32
    %c0_i32_0 = arith.constant 0 : i32
    return %arg0, %c0_i32 : i32, i32
  }
  func.func @transform_2(%arg0: i32) -> (i32, i32) {
    %c0_i32 = arith.constant 0 : i32
    %c0_i32_0 = arith.constant 0 : i32
    return %arg0, %c0_i32 : i32, i32
  }
  func.func @transform_3(%arg0: i32) -> (i32, i32) {
    %c0_i32 = arith.constant 0 : i32
    %c0_i32_0 = arith.constant 0 : i32
    %c0_i32_1 = arith.constant 0 : i32
    return %c0_i32, %c0_i32_0 : i32, i32
  }
  func.func @transform_4(%arg0: i32) -> (i32, i32) {
    %c0_i32 = arith.constant 0 : i32
    %c0_i32_0 = arith.constant 0 : i32
    %c0_i32_1 = arith.constant 0 : i32
    return %c0_i32, %c0_i32_0 : i32, i32
  }
  func.func @transform_5(%arg0: i32) -> (i32, i32) {
    %c0_i32 = arith.constant 0 : i32
    %c0_i32_0 = arith.constant 0 : i32
    %c0_i32_1 = arith.constant 0 : i32
    return %c0_i32, %c0_i32_0 : i32, i32
  }
  func.func @transform_6(%arg0: i32) -> (i32, i32) {
    %c0_i32 = arith.constant 0 : i32
    %c0_i32_0 = arith.constant 0 : i32
    %c0_i32_1 = arith.constant 0 : i32
    return %c0_i32, %c0_i32_0 : i32, i32
  }
  func.func @transform_7(%arg0: i32) -> (i32, i32) {
    %c0_i32 = arith.constant 0 : i32
    %c0_i32_0 = arith.constant 0 : i32
    %c0_i32_1 = arith.constant 0 : i32
    return %c0_i32, %c0_i32_0 : i32, i32
  }
  func.func @transform_8(%arg0: i32) -> (i32, i32) {
    %c0_i32 = arith.constant 0 : i32
    %c0_i32_0 = arith.constant 0 : i32
    %c0_i32_1 = arith.constant 0 : i32
    return %c0_i32, %c0_i32_0 : i32, i32
  }
  func.func @transform_9(%arg0: i32) -> (i32, i32) {
    %c0_i32 = arith.constant 0 : i32
    %c0_i32_0 = arith.constant 0 : i32
    %c0_i32_1 = arith.constant 0 : i32
    return %c0_i32, %c0_i32_0 : i32, i32
  }
  func.func @transform_10(%arg0: i32) -> (i32, i32) {
    %c0_i32 = arith.constant 0 : i32
    %c0_i32_0 = arith.constant 0 : i32
    %c0_i32_1 = arith.constant 0 : i32
    return %c0_i32, %c0_i32_0 : i32, i32
  }
  func.func @transform_11(%arg0: i32) -> (i32, i32) {
    %c0_i32 = arith.constant 0 : i32
    %c0_i32_0 = arith.constant 0 : i32
    %c0_i32_1 = arith.constant 0 : i32
    return %c0_i32, %c0_i32_0 : i32, i32
  }
  func.func @transform_12(%arg0: i32) -> (i32, i32) {
    %c0_i32 = arith.constant 0 : i32
    %c0_i32_0 = arith.constant 0 : i32
    %c0_i32_1 = arith.constant 0 : i32
    return %c0_i32, %c0_i32_0 : i32, i32
  }
  func.func @transform_13(%arg0: i32) -> (i32, i32) {
    %c0_i32 = arith.constant 0 : i32
    %c0_i32_0 = arith.constant 0 : i32
    %c0_i32_1 = arith.constant 0 : i32
    return %c0_i32, %c0_i32_0 : i32, i32
  }
  func.func @transform_14(%arg0: i32) -> (i32, i32) {
    %c0_i32 = arith.constant 0 : i32
    %c0_i32_0 = arith.constant 0 : i32
    %c0_i32_1 = arith.constant 0 : i32
    return %c0_i32, %c0_i32_0 : i32, i32
  }
  func.func @transform_15(%arg0: i32) -> (i32, i32) {
    %c0_i32 = arith.constant 0 : i32
    %c0_i32_0 = arith.constant 0 : i32
    %c0_i32_1 = arith.constant 0 : i32
    return %c0_i32, %c0_i32_0 : i32, i32
  }
  func.func @transform_16(%arg0: i32) -> (i32, i32) {
    %c0_i32 = arith.constant 0 : i32
    %c0_i32_0 = arith.constant 0 : i32
    %c0_i32_1 = arith.constant 0 : i32
    return %c0_i32, %c0_i32_0 : i32, i32
  }
  func.func @transform_17(%arg0: i32) -> (i32, i32) {
    %c0_i32 = arith.constant 0 : i32
    %c0_i32_0 = arith.constant 0 : i32
    %c0_i32_1 = arith.constant 0 : i32
    return %c0_i32, %c0_i32_0 : i32, i32
  }
  func.func @transform_18(%arg0: i32) -> (i32, i32) {
    %c0_i32 = arith.constant 0 : i32
    %c0_i32_0 = arith.constant 0 : i32
    %c0_i32_1 = arith.constant 0 : i32
    return %c0_i32, %c0_i32_0 : i32, i32
  }
  func.func @transform_19(%arg0: i32) -> (i32, i32) {
    %c0_i32 = arith.constant 0 : i32
    %c0_i32_0 = arith.constant 0 : i32
    %c0_i32_1 = arith.constant 0 : i32
    return %c0_i32, %c0_i32_0 : i32, i32
  }
  func.func @transform_20(%arg0: i32) -> (i32, i32) {
    %c0_i32 = arith.constant 0 : i32
    %c0_i32_0 = arith.constant 0 : i32
    %c0_i32_1 = arith.constant 0 : i32
    return %c0_i32, %c0_i32_0 : i32, i32
  }
  func.func @transform_21(%arg0: i32) -> (i32, i32) {
    %c0_i32 = arith.constant 0 : i32
    %c0_i32_0 = arith.constant 0 : i32
    %c0_i32_1 = arith.constant 0 : i32
    return %c0_i32, %c0_i32_0 : i32, i32
  }
  func.func @transform_22(%arg0: i32) -> (i32, i32) {
    %c0_i32 = arith.constant 0 : i32
    %c0_i32_0 = arith.constant 0 : i32
    return %arg0, %c0_i32 : i32, i32
  }
}

</mosaic_0001>

<bundles_post_ra>
// kernel: tpu_custom_call.1
= control target key start
LH: loop header
LB: loop body
LE: loop exit
PB: predicated region body
PF: predicated region fallthrough
CT: control target
= control target key end

     0   :  { %s2387_s0 = inlined_call_operand.hbm [shape: f32[8,128], index: 0, kind: input, shape index: {}]   ;;  %s2388_s1 = inlined_call_operand.hbm [shape: f32[8,128], index: 1, kind: input, shape index: {}]   ;;  %s2389_s2 = inlined_call_operand.hbm [shape: f32[8,128], index: 2, kind: input, shape index: {}]   ;;  %s2390_s3 = inlined_call_operand.hbm [shape: f32[128,128], index: 3, kind: input, shape index: {}]   ;;  %s2391_s4 = inlined_call_operand.hbm [shape: f32[128,128], index: 4, kind: input, shape index: {}]   ;;  %s2392_s5 = inlined_call_operand.vmem [shape: f32[1,128], index: 5, kind: input, shape index: {}]   ;;  %s2393_s6 = inlined_call_operand.hbm [shape: f32[128,128], index: 6, kind: input, shape index: {}]   ;;  %s2394_s7 = inlined_call_operand.vmem [shape: f32[1,128], index: 7, kind: input, shape index: {}]   ;;  %s2395_s8 = inlined_call_operand.hbm [shape: f32[128,128], index: 8, kind: input, shape index: {}]   ;;  %s2396_s9 = inlined_call_operand.vmem [shape: f32[1,128], index: 9, kind: input, shape index: {}]   ;;  %s2397_s10 = inlined_call_operand.hbm [shape: f32[128,128], index: 10, kind: input, shape index: {}]   ;;  %s2398_s11 = inlined_call_operand.vmem [shape: f32[1,128], index: 11, kind: input, shape index: {}]   ;;  %s2399_s12 = inlined_call_operand.hbm [shape: f32[128,128], index: 12, kind: input, shape index: {}]   ;;  %s2400_s13 = inlined_call_operand.hbm [shape: f32[128,128], index: 13, kind: input, shape index: {}]   ;;  %s2401_s14 = inlined_call_operand.vmem [shape: f32[1,128], index: 14, kind: input, shape index: {}]   ;;  %s2402_s15 = inlined_call_operand.hbm [shape: f32[128,128], index: 15, kind: input, shape index: {}]   ;;  %s2403_s16 = inlined_call_operand.vmem [shape: f32[1,128], index: 16, kind: input, shape index: {}]   ;;  %s2404_s17 = inlined_call_operand.hbm [shape: f32[128,128], index: 17, kind: input, shape index: {}]   ;;  %s2405_s18 = inlined_call_operand.vmem [shape: f32[1,128], index: 18, kind: input, shape index: {}]   ;;  %s2406_s19 = inlined_call_operand.vmem [shape: f32[1,128], index: 19, kind: input, shape index: {}]   ;;  %s2407_s20 = inlined_call_operand.<no memory space> [shape: f32[1,1], index: 20, kind: input, shape index: {}]   ;;  %s2408_s21 = inlined_call_operand.vmem [shape: f32[1,128], index: 21, kind: input, shape index: {}]   ;;  %s2409_s22 = inlined_call_operand.hbm [shape: f32[8,128], index: 22, kind: output, shape index: {}]  }
   0x1   :  { %2410 = sst [smem:[#allocation32_spill]] %s2387_s0  ;;  %v27_v0 = vstv %s2407_s20 }
   0x2   :  { %2411 = sst [smem:[#allocation33_spill]] %s2388_s1  ;;  %28 = vst [vmem:[#allocation2] sm:$0x1] %v27_v0 }
   0x3   :  { %2412 = sst [smem:[#allocation34_spill]] %s2389_s2 }
   0x4   :  { %2413 = sst [smem:[#allocation35_spill]] %s2390_s3 }
   0x5   :  { %2414 = sst [smem:[#allocation36_spill]] %s2391_s4 }
   0x6   :  { %2415 = sst [smem:[#allocation37_spill]] %s2392_s5 }
   0x7   :  { %2416 = sst [smem:[#allocation38_spill]] %s2393_s6 }
   0x8   :  { %29 = vsyncpa [#allocation4], 0 }
   0x9   :  { %30 = vsyncpa [#allocation7], 0 }
   0xa   :  { %31 = vsyncpa [#allocation10], 0 }
   0xb   :  { %32 = vsyncpa [#allocation13], 0 }
   0xc   :  { %33 = vsyncpa [#allocation16], 0 }
   0xd   :  { %34 = vsyncpa [#allocation19], 0 }
   0xe   :  { %35 = vsyncpa [#allocation22], 0 }
   0xf   :  { %36 = vsyncpa [#allocation5], 0  ;;  %s1984_s29 = smov [#allocation6]   ;;  %s1985_s4 = smov [#allocation9]  }
  0x10   :  { %s53_s30 = sshll.u32 %s1984_s29, 4  ;;  %s72_s0 = sshll.u32 %s1985_s4, 4  ;;  %s54_s30 = int_to_ptr.vmem [resolvable:$true] %s53_s30  ;;  %s73_s0 = int_to_ptr.vmem [resolvable:$true] %s72_s0 }
  0x11   :  { %s1716_s23 = scalar_lea.vmem %s54_s30, 128  ;;  %p1721_p1 = scmp.lt.s32.totalorder %s54_s30, %s54_s30 }
  0x12   :  { %p1717_p0 = scmp.ne.s32.totalorder %s54_s30, %s1716_s23  ;;  %p1722_p2 = scmp.lt.s32.totalorder %s1716_s23, %s1716_s23 }
  0x14   :  { %p1723_p3 = por %p1722_p2, %p1721_p1 }
  0x16   :  { %p1724_p4 = pnand %p1723_p3, %p1717_p0 }
  0x18   :  { %1727 = shalt.err (!%p1724_p4)
}
  0x19   :  { %s2417_s5 = sld [smem:[#allocation33_spill]]  ;;  %s1736_s24 = scalar_lea.vmem %s73_s0, 2048 }
  0x1a   :  { %p1737_p5 = scmp.ne.s32.totalorder %s73_s0, %s1736_s24  ;;  %p1741_p6 = scmp.lt.s32.totalorder %s73_s0, %s73_s0 }
  0x1b   :  { %p1742_p7 = scmp.lt.s32.totalorder %s1736_s24, %s1736_s24 }
  0x1d   :  { %p1743_p8 = por %p1742_p7, %p1741_p6 }
  0x1f   :  { %56 = dma.hbm_to_vmem [thread:$0]  %s2417_s5, 128, %s54_s30, [#allocation7]  }
  0x20   :  { %p1744_p9 = pnand %p1743_p8, %p1737_p5 }
  0x22   :  { %1747 = shalt.err (!%p1744_p9)
}
  0x23   :  { %s1986_s6 = smov 128   ;;  %s1987_s25 = smov 8  }
  0x24   :  { %s2418_s27 = sld [smem:[#allocation35_spill]]  ;;  %s1988_s3 = smov [#allocation12]  }
  0x25   :  { %s98_s28 = sshll.u32 %s1988_s3, 4  ;;  %s1989_s29 = smov [#allocation15]   ;;  %s99_s28 = int_to_ptr.vmem [resolvable:$true] %s98_s28 }
  0x26   :  { %s126_s30 = sshll.u32 %s1989_s29, 4  ;;  %s1756_s4 = scalar_lea.vmem %s99_s28, 2048  ;;  %s127_s30 = int_to_ptr.vmem [resolvable:$true] %s126_s30 }
  0x27   :  { %p1757_p10 = scmp.ne.s32.totalorder %s99_s28, %s1756_s4  ;;  %p1761_p11 = scmp.lt.s32.totalorder %s99_s28, %s99_s28 }
  0x28   :  { %p1762_p12 = scmp.lt.s32.totalorder %s1756_s4, %s1756_s4 }
  0x2a   :  { %78 = dma.hbm_to_vmem [thread:$0]  %s2418_s27, 2048, %s73_s0, [#allocation10], %s1986_s6, %s1986_s6, %s1987_s25  }
  0x2b   :  { %p1763_p13 = por %p1762_p12, %p1761_p11 }
  0x2d   :  { %p1764_p0 = pnand %p1763_p13, %p1757_p10 }
  0x2f   :  { %1767 = shalt.err (!%p1764_p0)
}
  0x30   :  { %s2419_s1 = sld [smem:[#allocation38_spill]]  ;;  %s1776_s0 = scalar_lea.vmem %s127_s30, 2048 }
  0x31   :  { %p1777_p1 = scmp.ne.s32.totalorder %s127_s30, %s1776_s0  ;;  %p1781_p2 = scmp.lt.s32.totalorder %s127_s30, %s127_s30 }
  0x32   :  { %p1782_p3 = scmp.lt.s32.totalorder %s1776_s0, %s1776_s0 }
  0x34   :  { %p1783_p4 = por %p1782_p3, %p1781_p2 }
  0x36   :  { %104 = dma.hbm_to_vmem [thread:$0]  %s2419_s1, 2048, %s99_s28, [#allocation13], %s1986_s6, %s1986_s6, %s1987_s25  }
  0x37   :  { %p1784_p5 = pnand %p1783_p4, %p1777_p1 }
  0x39   :  { %1787 = shalt.err (!%p1784_p5)
}
  0x3a   :  { %132 = dma.hbm_to_vmem [thread:$0]  %s2397_s10, 2048, %s127_s30, [#allocation16], %s1986_s6, %s1986_s6, %s1987_s25  }
  0x3b   :  { %s1990_s26 = smov [#allocation18]   ;;  %s1991_s27 = smov [#allocation3]  }
  0x3c   :  { %s152_s2 = sshll.u32 %s1990_s26, 4  ;;  %s43_s3 = sshll.u32 %s1991_s27, 4  ;;  %s153_s2 = int_to_ptr.vmem [resolvable:$true] %s152_s2  ;;  %s44_s3 = int_to_ptr.vmem [resolvable:$true] %s43_s3 }
  0x3d   :  { %s1796_s28 = scalar_lea.vmem %s153_s2, 2048  ;;  %p1801_p7 = scmp.lt.s32.totalorder %s153_s2, %s153_s2 }
  0x3e   :  { %p1797_p6 = scmp.ne.s32.totalorder %s153_s2, %s1796_s28  ;;  %p1802_p8 = scmp.lt.s32.totalorder %s1796_s28, %s1796_s28 }
  0x40   :  { %p1803_p9 = por %p1802_p8, %p1801_p7 }
  0x42   :  { %p1804_p10 = pnand %p1803_p9, %p1797_p6 }
  0x44   :  { %1807 = shalt.err (!%p1804_p10)
}
  0x45   :  { %158 = dma.hbm_to_vmem [thread:$0]  %s2400_s13, 2048, %s153_s2, [#allocation19], %s1986_s6, %s1986_s6, %s1987_s25  }
  0x46   :  { %s1816_s10 = scalar_lea.vmem %s44_s3, 128  ;;  %p1821_p12 = scmp.lt.s32.totalorder %s44_s3, %s44_s3 }
  0x47   :  { %p1817_p11 = scmp.ne.s32.totalorder %s44_s3, %s1816_s10  ;;  %p1822_p13 = scmp.lt.s32.totalorder %s1816_s10, %s1816_s10 }
  0x49   :  { %p1823_p0 = por %p1822_p13, %p1821_p12 }
  0x4b   :  { %p1824_p1 = pnand %p1823_p0, %p1817_p11 }
  0x4d   :  { %1827 = shalt.err (!%p1824_p1)
}
  0x4e   :  { %s2420_s20 = sld [smem:[#allocation32_spill]]  ;;  %s1992_s1 = smov [#allocation8]  }
  0x4f   :  { %s63_s0 = sshll.u32 %s1992_s1, 4  ;;  %s1993_s5 = smov [#allocation11]   ;;  %s64_s0 = int_to_ptr.vmem [resolvable:$true] %s63_s0 }
  0x50   :  { %s84_s24 = sshll.u32 %s1993_s5, 4  ;;  %s1836_s26 = scalar_lea.vmem %s64_s0, 128  ;;  %s85_s24 = int_to_ptr.vmem [resolvable:$true] %s84_s24 }
  0x51   :  { %p1837_p2 = scmp.ne.s32.totalorder %s64_s0, %s1836_s26  ;;  %p1841_p3 = scmp.lt.s32.totalorder %s64_s0, %s64_s0 }
  0x52   :  { %p1842_p4 = scmp.lt.s32.totalorder %s1836_s26, %s1836_s26 }
  0x54   :  { %46 = dma.hbm_to_vmem [thread:$0]  %s2420_s20, 128, %s44_s3, [#allocation4]  }
  0x55   :  { %p1843_p5 = por %p1842_p4, %p1841_p3 }
  0x57   :  { %p1844_p6 = pnand %p1843_p5, %p1837_p2 }
  0x59   :  { %1847 = shalt.err (!%p1844_p6)
}
  0x5a   :  { %s2421_s27 = sld [smem:[#allocation34_spill]]  ;;  %s1856_s28 = scalar_lea.vmem %s85_s24, 2048 }
  0x5b   :  { %p1857_p7 = scmp.ne.s32.totalorder %s85_s24, %s1856_s28  ;;  %p1861_p8 = scmp.lt.s32.totalorder %s85_s24, %s85_s24 }
  0x5c   :  { %p1862_p9 = scmp.lt.s32.totalorder %s1856_s28, %s1856_s28 }
  0x5e   :  { %p1863_p10 = por %p1862_p9, %p1861_p8 }
  0x60   :  { %66 = dma.hbm_to_vmem [thread:$0]  %s2421_s27, 128, %s64_s0, [#allocation7]  }
  0x61   :  { %p1864_p11 = pnand %p1863_p10, %p1857_p7 }
  0x63   :  { %1867 = shalt.err (!%p1864_p11)
}
  0x64   :  { %s2422_s4 = sld [smem:[#allocation36_spill]]  ;;  %s1994_s10 = smov [#allocation14]  }
  0x65   :  { %s112_s30 = sshll.u32 %s1994_s10, 4  ;;  %s1995_s23 = smov [#allocation17]   ;;  %s113_s30 = int_to_ptr.vmem [resolvable:$true] %s112_s30 }
  0x66   :  { %s140_s20 = sshll.u32 %s1995_s23, 4  ;;  %s1876_s1 = scalar_lea.vmem %s113_s30, 2048  ;;  %s141_s20 = int_to_ptr.vmem [resolvable:$true] %s140_s20 }
  0x67   :  { %p1877_p12 = scmp.ne.s32.totalorder %s113_s30, %s1876_s1  ;;  %p1881_p13 = scmp.lt.s32.totalorder %s113_s30, %s113_s30 }
  0x68   :  { %p1882_p0 = scmp.lt.s32.totalorder %s1876_s1, %s1876_s1 }
  0x6a   :  { %90 = dma.hbm_to_vmem [thread:$0]  %s2422_s4, 2048, %s85_s24, [#allocation10], %s1986_s6, %s1986_s6, %s1987_s25  }
  0x6b   :  { %p1883_p1 = por %p1882_p0, %p1881_p13 }
  0x6d   :  { %p1884_p2 = pnand %p1883_p1, %p1877_p12 }
  0x6f   :  { %1887 = shalt.err (!%p1884_p2)
}
  0x70   :  { %118 = dma.hbm_to_vmem [thread:$0]  %s2395_s8, 2048, %s113_s30, [#allocation13], %s1986_s6, %s1986_s6, %s1987_s25  }
  0x71   :  { %s1896_s24 = scalar_lea.vmem %s141_s20, 2048  ;;  %p1901_p4 = scmp.lt.s32.totalorder %s141_s20, %s141_s20 }
  0x72   :  { %p1897_p3 = scmp.ne.s32.totalorder %s141_s20, %s1896_s24  ;;  %p1902_p5 = scmp.lt.s32.totalorder %s1896_s24, %s1896_s24 }
  0x74   :  { %p1903_p6 = por %p1902_p5, %p1901_p4 }
  0x76   :  { %p1904_p7 = pnand %p1903_p6, %p1897_p3 }
  0x78   :  { %1907 = shalt.err (!%p1904_p7)
}
  0x79   :  { %146 = dma.hbm_to_vmem [thread:$0]  %s2399_s12, 2048, %s141_s20, [#allocation16], %s1986_s6, %s1986_s6, %s1987_s25  }
  0x7a   :  { %s1996_s2 = smov [#allocation20]   ;;  %s1997_s28 = smov [#allocation21]  }
  0x7b   :  { %s166_s27 = sshll.u32 %s1996_s2, 4  ;;  %s180_s3 = sshll.u32 %s1997_s28, 4  ;;  %s167_s27 = int_to_ptr.vmem [resolvable:$true] %s166_s27  ;;  %s181_s3 = int_to_ptr.vmem [resolvable:$true] %s180_s3 }
  0x7c   :  { %s1916_s8 = scalar_lea.vmem %s167_s27, 2048  ;;  %p1921_p9 = scmp.lt.s32.totalorder %s167_s27, %s167_s27 }
  0x7d   :  { %p1917_p8 = scmp.ne.s32.totalorder %s167_s27, %s1916_s8  ;;  %p1922_p10 = scmp.lt.s32.totalorder %s1916_s8, %s1916_s8 }
  0x7f   :  { %p1923_p11 = por %p1922_p10, %p1921_p9 }
  0x81   :  { %p1924_p12 = pnand %p1923_p11, %p1917_p8 }
  0x83   :  { %1927 = shalt.err (!%p1924_p12)
}
  0x84   :  { %172 = dma.hbm_to_vmem [thread:$0]  %s2402_s15, 2048, %s167_s27, [#allocation19], %s1986_s6, %s1986_s6, %s1987_s25  }
  0x85   :  { %s1936_s12 = scalar_lea.vmem %s181_s3, 2048  ;;  %p1941_p0 = scmp.lt.s32.totalorder %s181_s3, %s181_s3 }
  0x86   :  { %p1937_p13 = scmp.ne.s32.totalorder %s181_s3, %s1936_s12  ;;  %p1942_p1 = scmp.lt.s32.totalorder %s1936_s12, %s1936_s12 }
  0x88   :  { %p1943_p2 = por %p1942_p1, %p1941_p0 }
  0x8a   :  { %p1944_p3 = pnand %p1943_p2, %p1937_p13 }
  0x8c   :  { %1947 = shalt.err (!%p1944_p3)
}
  0x8d   :  { %186 = dma.hbm_to_vmem [thread:$0]  %s2404_s17, 2048, %s181_s3, [#allocation22], %s1986_s6, %s1986_s6, %s1987_s25  }
  0x8e   :  { %1968 = dma.done.wait [#allocation4], 128  }
  0x8f   :  { %1969 = vsyncadd [#allocation4], 4294967168 }
  0x90   :  { %1970 = dma.done.wait [#allocation7], 256  }
  0x91   :  { %1971 = vsyncadd [#allocation7], 4294967040 }
  0x92   :  { %1972 = dma.done.wait [#allocation10], 4096  }
  0x93   :  { %1973 = vsyncadd [#allocation10], 4294963200 }
  0x94   :  { %1974 = dma.done.wait [#allocation13], 4096  }
  0x95   :  { %1975 = vsyncadd [#allocation13], 4294963200 }
  0x96   :  { %1976 = dma.done.wait [#allocation16], 4096  }
  0x97   :  { %1977 = vsyncadd [#allocation16], 4294963200 }
  0x98   :  { %1978 = dma.done.wait [#allocation19], 4096  }
  0x99   :  { %1979 = vsyncadd [#allocation19], 4294963200 }
  0x9a   :  { %1980 = dma.done.wait [#allocation22], 2048  }
  0x9b   :  { %1981 = vsyncadd [#allocation22], 4294965248  ;;  %v1998_v1 = vmov 0.0   ;;  %vm1999_vm0 = vmmov 0   ;;  %v265_v2 = vld [vmem:[#allocation11 + $0x78] sm:$0xff]  ;;  %v264_v4 = vld [vmem:[#allocation11 + $0x70] sm:$0xff] }
  0x9c   :  { %1357 = vmatprep.subr.mxu0 %v1998_v1  ;;  %1392 = vmatprep.subr.mxu1 %v1998_v1  ;;  %v249_v3 = vld [vmem:[#allocation9 + $0x78] sm:$0xff]  ;;  %v248_v5 = vld [vmem:[#allocation9 + $0x70] sm:$0xff]  ;;  %v263_v6 = vld [vmem:[#allocation11 + $0x68] sm:$0xff]  ;;  %s2423_s6 = sld [smem:[#allocation37_spill]]  ;;  %vm1131_vm5 = vcmask 1040384  }
  0x9d   :  { %1389 = vmatprep.mubr.msk.f32.mxu0 %vm1999_vm0, %v1998_v1  ;;  %1424 = vmatprep.mubr.msk.f32.mxu1 %vm1999_vm0, %v1998_v1  ;;  %v247_v7 = vld [vmem:[#allocation9 + $0x68] sm:$0xff]  ;;  %v262_v8 = vld [vmem:[#allocation11 + $0x60] sm:$0xff]  ;;  %v261_v10 = vld [vmem:[#allocation11 + $0x58] sm:$0xff] }
  0x9e   :  { %1358 = vmatpush3.msra.mxu0 %v265_v2  ;;  %1393 = vmatpush3.msra.mxu1 %v249_v3  ;;  %v246_v9 = vld [vmem:[#allocation9 + $0x60] sm:$0xff]  ;;  %v245_v11 = vld [vmem:[#allocation9 + $0x58] sm:$0xff]  ;;  %v260_v12 = vld [vmem:[#allocation11 + $0x50] sm:$0xff] }
  0x9f   :  { %1359 = vmatprep.subr.mxu0 %v1998_v1  ;;  %1394 = vmatprep.subr.mxu1 %v1998_v1  ;;  %v244_v13 = vld [vmem:[#allocation9 + $0x50] sm:$0xff]  ;;  %v259_v14 = vld [vmem:[#allocation11 + $0x48] sm:$0xff]  ;;  %v258_v16 = vld [vmem:[#allocation11 + $0x40] sm:$0xff] }
  0xa0   :  { %1360 = vmatpush3.msra.mxu0 %v264_v4  ;;  %1395 = vmatpush3.msra.mxu1 %v248_v5  ;;  %v243_v15 = vld [vmem:[#allocation9 + $0x48] sm:$0xff]  ;;  %v242_v17 = vld [vmem:[#allocation9 + $0x40] sm:$0xff]  ;;  %v257_v18 = vld [vmem:[#allocation11 + $0x38] sm:$0xff] }
  0xa1   :  { %1361 = vmatprep.subr.mxu0 %v1998_v1  ;;  %1396 = vmatprep.subr.mxu1 %v1998_v1  ;;  %v241_v19 = vld [vmem:[#allocation9 + $0x38] sm:$0xff]  ;;  %v256_v20 = vld [vmem:[#allocation11 + $0x30] sm:$0xff]  ;;  %v255_v22 = vld [vmem:[#allocation11 + $0x28] sm:$0xff] }
  0xa2   :  { %1362 = vmatpush3.msra.mxu0 %v263_v6  ;;  %1397 = vmatpush3.msra.mxu1 %v247_v7  ;;  %v240_v21 = vld [vmem:[#allocation9 + $0x30] sm:$0xff]  ;;  %v239_v23 = vld [vmem:[#allocation9 + $0x28] sm:$0xff]  ;;  %v254_v24 = vld [vmem:[#allocation11 + $0x20] sm:$0xff] }
  0xa3   :  { %1363 = vmatprep.subr.mxu0 %v1998_v1  ;;  %1398 = vmatprep.subr.mxu1 %v1998_v1  ;;  %v238_v25 = vld [vmem:[#allocation9 + $0x20] sm:$0xff]  ;;  %v253_v26 = vld [vmem:[#allocation11 + $0x18] sm:$0xff]  ;;  %v252_v28 = vld [vmem:[#allocation11 + $0x10] sm:$0xff] }
  0xa4   :  { %1364 = vmatpush3.msra.mxu0 %v262_v8  ;;  %1399 = vmatpush3.msra.mxu1 %v246_v9  ;;  %v237_v27 = vld [vmem:[#allocation9 + $0x18] sm:$0xff]  ;;  %v236_v29 = vld [vmem:[#allocation9 + $0x10] sm:$0xff]  ;;  %v251_v30 = vld [vmem:[#allocation11 + $0x8] sm:$0xff] }
  0xa5   :  { %1365 = vmatprep.subr.mxu0 %v1998_v1  ;;  %1400 = vmatprep.subr.mxu1 %v1998_v1  ;;  %v235_v31 = vld [vmem:[#allocation9 + $0x8] sm:$0xff]  ;;  %v250_v32 = vld [vmem:[#allocation11] sm:$0xff]  ;;  %v2217_v34 = vld [vmem:[#allocation6] sm:$0xff] }
  0xa6   :  { %1366 = vmatpush3.msra.mxu0 %v261_v10  ;;  %1401 = vmatpush3.msra.mxu1 %v245_v11  ;;  %v234_v33 = vld [vmem:[#allocation9] sm:$0xff]  ;;  %v2219_v35 = vld [vmem:[#allocation3] sm:$0xff]  ;;  %v436_v36 = vld [vmem:[#allocation12 + $0x78] sm:$0xff] }
  0xa7   :  { %1367 = vmatprep.subr.mxu0 %v1998_v1  ;;  %1402 = vmatprep.subr.mxu1 %v1998_v1  ;;  %v435_v37 = vld [vmem:[#allocation12 + $0x70] sm:$0xff]  ;;  %v434_v38 = vld [vmem:[#allocation12 + $0x68] sm:$0xff]  ;;  %v433_v39 = vld [vmem:[#allocation12 + $0x60] sm:$0xff] }
  0xa8   :  { %1368 = vmatpush3.msra.mxu0 %v260_v12  ;;  %1403 = vmatpush3.msra.mxu1 %v244_v13  ;;  %v432_v40 = vld [vmem:[#allocation12 + $0x58] sm:$0xff]  ;;  %v431_v41 = vld [vmem:[#allocation12 + $0x50] sm:$0xff]  ;;  %v430_v42 = vld [vmem:[#allocation12 + $0x48] sm:$0xff] }
  0xa9   :  { %1369 = vmatprep.subr.mxu0 %v1998_v1  ;;  %1404 = vmatprep.subr.mxu1 %v1998_v1  ;;  %v429_v43 = vld [vmem:[#allocation12 + $0x40] sm:$0xff]  ;;  %v428_v44 = vld [vmem:[#allocation12 + $0x38] sm:$0xff]  ;;  %v427_v45 = vld [vmem:[#allocation12 + $0x30] sm:$0xff] }
  0xaa   :  { %1370 = vmatpush3.msra.mxu0 %v259_v14  ;;  %1405 = vmatpush3.msra.mxu1 %v243_v15  ;;  %v426_v46 = vld [vmem:[#allocation12 + $0x28] sm:$0xff]  ;;  %v425_v47 = vld [vmem:[#allocation12 + $0x20] sm:$0xff]  ;;  %v424_v48 = vld [vmem:[#allocation12 + $0x18] sm:$0xff] }
  0xab   :  { %1371 = vmatprep.subr.mxu0 %v1998_v1  ;;  %1406 = vmatprep.subr.mxu1 %v1998_v1  ;;  %v423_v49 = vld [vmem:[#allocation12 + $0x10] sm:$0xff]  ;;  %v422_v50 = vld [vmem:[#allocation12 + $0x8] sm:$0xff]  ;;  %v421_v51 = vld [vmem:[#allocation12] sm:$0xff] }
  0xac   :  { %1372 = vmatpush3.msra.mxu0 %v258_v16  ;;  %1407 = vmatpush3.msra.mxu1 %v242_v17  ;;  %v536_v52 = vld [vmem:[#allocation14 + $0x78] sm:$0xff]  ;;  %v535_v53 = vld [vmem:[#allocation14 + $0x70] sm:$0xff]  ;;  %v534_v54 = vld [vmem:[#allocation14 + $0x68] sm:$0xff] }
  0xad   :  { %1373 = vmatprep.subr.mxu0 %v1998_v1  ;;  %1408 = vmatprep.subr.mxu1 %v1998_v1  ;;  %v1188_v57 = vld [vmem:[%s2423_s6] ss:$0 sm:$0xff]  ;;  %v532_v6 = vld [vmem:[#allocation14 + $0x58] sm:$0xff]  ;;  %v531_v7 = vld [vmem:[#allocation14 + $0x50] sm:$0xff] }
  0xae   :  { %1374 = vmatpush3.msra.mxu0 %v257_v18  ;;  %1409 = vmatpush3.msra.mxu1 %v241_v19  ;;  %v533_v5 = vld [vmem:[#allocation14 + $0x60] sm:$0xff]  ;;  %v530_v8 = vld [vmem:[#allocation14 + $0x48] sm:$0xff]  ;;  %v528_v10 = vld [vmem:[#allocation14 + $0x38] sm:$0xff] }
  0xaf   :  { %1375 = vmatprep.subr.mxu0 %v1998_v1  ;;  %1410 = vmatprep.subr.mxu1 %v1998_v1  ;;  %v529_v9 = vld [vmem:[#allocation14 + $0x40] sm:$0xff]  ;;  %v527_v11 = vld [vmem:[#allocation14 + $0x30] sm:$0xff]  ;;  %v526_v12 = vld [vmem:[#allocation14 + $0x28] sm:$0xff] }
  0xb0   :  { %1376 = vmatpush3.msra.mxu0 %v256_v20  ;;  %1411 = vmatpush3.msra.mxu1 %v240_v21  ;;  %v525_v13 = vld [vmem:[#allocation14 + $0x20] sm:$0xff]  ;;  %v524_v14 = vld [vmem:[#allocation14 + $0x18] sm:$0xff]  ;;  %v523_v15 = vld [vmem:[#allocation14 + $0x10] sm:$0xff] }
  0xb1   :  { %1377 = vmatprep.subr.mxu0 %v1998_v1  ;;  %1412 = vmatprep.subr.mxu1 %v1998_v1  ;;  %v522_v16 = vld [vmem:[#allocation14 + $0x8] sm:$0xff]  ;;  %v521_v17 = vld [vmem:[#allocation14] sm:$0xff]  ;;  %v636_v18 = vld [vmem:[#allocation15 + $0x78] sm:$0xff] }
  0xb2   :  { %1378 = vmatpush3.msra.mxu0 %v255_v22  ;;  %1413 = vmatpush3.msra.mxu1 %v239_v23  ;;  %v635_v19 = vld [vmem:[#allocation15 + $0x70] sm:$0xff]  ;;  %v634_v20 = vld [vmem:[#allocation15 + $0x68] sm:$0xff]  ;;  %v1190_v21 = vld [vmem:[%s2394_s7] ss:$0 sm:$0xff] }
  0xb3   :  { %1379 = vmatprep.subr.mxu0 %v1998_v1  ;;  %1414 = vmatprep.subr.mxu1 %v1998_v1 }
  0xb4   :  { %1380 = vmatpush3.msra.mxu0 %v254_v24  ;;  %1415 = vmatpush3.msra.mxu1 %v238_v25 }
  0xb5   :  { %1381 = vmatprep.subr.mxu0 %v1998_v1  ;;  %1416 = vmatprep.subr.mxu1 %v1998_v1 }
  0xb6   :  { %1382 = vmatpush3.msra.mxu0 %v253_v26  ;;  %1417 = vmatpush3.msra.mxu1 %v237_v27 }
  0xb7   :  { %1383 = vmatprep.subr.mxu0 %v1998_v1  ;;  %1418 = vmatprep.subr.mxu1 %v1998_v1 }
  0xb8   :  { %1384 = vmatpush3.msra.mxu0 %v252_v28  ;;  %1419 = vmatpush3.msra.mxu1 %v236_v29 }
  0xb9   :  { %1385 = vmatprep.subr.mxu0 %v1998_v1  ;;  %1420 = vmatprep.subr.mxu1 %v1998_v1 }
  0xba   :  { %1386 = vmatpush3.msra.mxu0 %v251_v30  ;;  %1421 = vmatpush3.msra.mxu1 %v235_v31  ;;  %v633_v31 = vld [vmem:[#allocation15 + $0x60] sm:$0xff] }
  0xbb   :  { %1387 = vmatprep.subr.mxu0 %v1998_v1  ;;  %1422 = vmatprep.subr.mxu1 %v1998_v1 }
  0xbc   :  { %1388 = vmatpush3.msra.mxu0 %v250_v32  ;;  %1423 = vmatpush3.msra.mxu1 %v234_v33  ;;  %v632_v32 = vld [vmem:[#allocation15 + $0x58] sm:$0xff]  ;;  %v631_v33 = vld [vmem:[#allocation15 + $0x50] sm:$0xff] }
  0xbd   :  { %1390 = vmatmul.mubr.f32.vlgmr.msra.gmra.mxu0 %v2217_v34  ;;  %1425 = vmatmul.mubr.f32.vlgmr.msra.gmra.mxu1 %v2219_v35 }
  0xbe   :  { %1427 = vmatprep.subr.mxu0 %v1998_v1  ;;  %1459 = vmatprep.mubr.msk.f32.mxu0 %vm1999_vm0, %v1998_v1 }
  0xbf   :  { %1428 = vmatpush3.msra.mxu0 %v436_v36  ;;  %1462 = vmatprep.subr.mxu1 %v1998_v1  ;;  %v630_v36 = vld [vmem:[#allocation15 + $0x48] sm:$0xff] }
  0xc0   :  { %1429 = vmatprep.subr.mxu0 %v1998_v1  ;;  %1494 = vmatprep.mubr.msk.f32.mxu1 %vm1999_vm0, %v1998_v1 }
  0xc1   :  { %1430 = vmatpush3.msra.mxu0 %v435_v37  ;;  %1463 = vmatpush3.msra.mxu1 %v536_v52  ;;  %v629_v37 = vld [vmem:[#allocation15 + $0x40] sm:$0xff]  ;;  %v739_v52 = vld [vmem:[#allocation18 + $0x48] sm:$0xff] }
  0xc2   :  { %1431 = vmatprep.subr.mxu0 %v1998_v1  ;;  %1464 = vmatprep.subr.mxu1 %v1998_v1 }
  0xc3   :  { %1432 = vmatpush3.msra.mxu0 %v434_v38  ;;  %1465 = vmatpush3.msra.mxu1 %v535_v53  ;;  %v628_v38 = vld [vmem:[#allocation15 + $0x38] sm:$0xff]  ;;  %v738_v53 = vld [vmem:[#allocation18 + $0x40] sm:$0xff] }
  0xc4   :  { %1433 = vmatprep.subr.mxu0 %v1998_v1  ;;  %1466 = vmatprep.subr.mxu1 %v1998_v1 }
  0xc5   :  { %1434 = vmatpush3.msra.mxu0 %v433_v39  ;;  %1467 = vmatpush3.msra.mxu1 %v534_v54  ;;  %v627_v39 = vld [vmem:[#allocation15 + $0x30] sm:$0xff]  ;;  %v737_v54 = vld [vmem:[#allocation18 + $0x38] sm:$0xff] }
  0xc6   :  { %1435 = vmatprep.subr.mxu0 %v1998_v1  ;;  %1468 = vmatprep.subr.mxu1 %v1998_v1 }
  0xc7   :  { %1436 = vmatpush3.msra.mxu0 %v432_v40  ;;  %1469 = vmatpush3.msra.mxu1 %v533_v5  ;;  %v626_v40 = vld [vmem:[#allocation15 + $0x28] sm:$0xff] }
  0xc8   :  { %1437 = vmatprep.subr.mxu0 %v1998_v1  ;;  %1470 = vmatprep.subr.mxu1 %v1998_v1 }
  0xc9   :  { %1438 = vmatpush3.msra.mxu0 %v431_v41  ;;  %1471 = vmatpush3.msra.mxu1 %v532_v6  ;;  %v625_v41 = vld [vmem:[#allocation15 + $0x20] sm:$0xff] }
  0xca   :  { %1439 = vmatprep.subr.mxu0 %v1998_v1  ;;  %1472 = vmatprep.subr.mxu1 %v1998_v1 }
  0xcb   :  { %1440 = vmatpush3.msra.mxu0 %v430_v42  ;;  %1473 = vmatpush3.msra.mxu1 %v531_v7  ;;  %v624_v42 = vld [vmem:[#allocation15 + $0x18] sm:$0xff] }
  0xcc   :  { %1441 = vmatprep.subr.mxu0 %v1998_v1  ;;  %1474 = vmatprep.subr.mxu1 %v1998_v1 }
  0xcd   :  { %1442 = vmatpush3.msra.mxu0 %v429_v43  ;;  %1475 = vmatpush3.msra.mxu1 %v530_v8  ;;  %v623_v43 = vld [vmem:[#allocation15 + $0x10] sm:$0xff]  ;;  %v729_v8 = vld [vmem:[#allocation17 + $0x78] sm:$0xff] }
  0xce   :  { %1443 = vmatprep.subr.mxu0 %v1998_v1  ;;  %1476 = vmatprep.subr.mxu1 %v1998_v1 }
  0xcf   :  { %1444 = vmatpush3.msra.mxu0 %v428_v44  ;;  %1477 = vmatpush3.msra.mxu1 %v529_v9  ;;  %v622_v44 = vld [vmem:[#allocation15 + $0x8] sm:$0xff]  ;;  %v728_v9 = vld [vmem:[#allocation17 + $0x70] sm:$0xff] }
  0xd0   :  { %1445 = vmatprep.subr.mxu0 %v1998_v1  ;;  %1478 = vmatprep.subr.mxu1 %v1998_v1 }
  0xd1   :  { %1446 = vmatpush3.msra.mxu0 %v427_v45  ;;  %1479 = vmatpush3.msra.mxu1 %v528_v10  ;;  %v621_v45 = vld [vmem:[#allocation15] sm:$0xff]  ;;  %v727_v10 = vld [vmem:[#allocation17 + $0x68] sm:$0xff] }
  0xd2   :  { %1447 = vmatprep.subr.mxu0 %v1998_v1  ;;  %1480 = vmatprep.subr.mxu1 %v1998_v1 }
  0xd3   :  { %1448 = vmatpush3.msra.mxu0 %v426_v46  ;;  %1481 = vmatpush3.msra.mxu1 %v527_v11  ;;  %v745_v46 = vld [vmem:[#allocation18 + $0x78] sm:$0xff]  ;;  %v726_v11 = vld [vmem:[#allocation17 + $0x60] sm:$0xff] }
  0xd4   :  { %1449 = vmatprep.subr.mxu0 %v1998_v1  ;;  %1482 = vmatprep.subr.mxu1 %v1998_v1 }
  0xd5   :  { %1450 = vmatpush3.msra.mxu0 %v425_v47  ;;  %1483 = vmatpush3.msra.mxu1 %v526_v12  ;;  %v744_v47 = vld [vmem:[#allocation18 + $0x70] sm:$0xff]  ;;  %v725_v12 = vld [vmem:[#allocation17 + $0x58] sm:$0xff] }
  0xd6   :  { %1451 = vmatprep.subr.mxu0 %v1998_v1  ;;  %1484 = vmatprep.subr.mxu1 %v1998_v1 }
  0xd7   :  { %1452 = vmatpush3.msra.mxu0 %v424_v48  ;;  %1485 = vmatpush3.msra.mxu1 %v525_v13  ;;  %v743_v48 = vld [vmem:[#allocation18 + $0x68] sm:$0xff]  ;;  %v724_v13 = vld [vmem:[#allocation17 + $0x50] sm:$0xff] }
  0xd8   :  { %1453 = vmatprep.subr.mxu0 %v1998_v1  ;;  %1486 = vmatprep.subr.mxu1 %v1998_v1 }
  0xd9   :  { %1454 = vmatpush3.msra.mxu0 %v423_v49  ;;  %1487 = vmatpush3.msra.mxu1 %v524_v14  ;;  %v742_v49 = vld [vmem:[#allocation18 + $0x60] sm:$0xff]  ;;  %v723_v14 = vld [vmem:[#allocation17 + $0x48] sm:$0xff] }
  0xda   :  { %1455 = vmatprep.subr.mxu0 %v1998_v1  ;;  %1488 = vmatprep.subr.mxu1 %v1998_v1 }
  0xdb   :  { %1456 = vmatpush3.msra.mxu0 %v422_v50  ;;  %1489 = vmatpush3.msra.mxu1 %v523_v15  ;;  %v741_v50 = vld [vmem:[#allocation18 + $0x58] sm:$0xff]  ;;  %v722_v15 = vld [vmem:[#allocation17 + $0x40] sm:$0xff] }
  0xdc   :  { %1457 = vmatprep.subr.mxu0 %v1998_v1  ;;  %1490 = vmatprep.subr.mxu1 %v1998_v1 }
  0xdd   :  { %1458 = vmatpush3.msra.mxu0 %v421_v51  ;;  %1491 = vmatpush3.msra.mxu1 %v522_v16  ;;  %v740_v51 = vld [vmem:[#allocation18 + $0x50] sm:$0xff]  ;;  %v721_v16 = vld [vmem:[#allocation17 + $0x38] sm:$0xff] }
  0xde   :  { %1497 = vmatprep.subr.mxu0 %v1998_v1  ;;  %1492 = vmatprep.subr.mxu1 %v1998_v1 }
  0xdf   :  { %1493 = vmatpush3.msra.mxu1 %v521_v17  ;;  %v720_v17 = vld [vmem:[#allocation17 + $0x30] sm:$0xff] }
  0xe0   :  { %1532 = vmatprep.subr.mxu1 %v1998_v1 }
 0x17d   :  { %v332_v55 = vpop.f32.mrf.mxu0  ;;  %v402_v56 = vpop.f32.mrf.mxu1 }
 0x17e   :  { %v403_v58 = vadd.f32 %v402_v56, %v332_v55  ;;  %v736_v55 = vld [vmem:[#allocation18 + $0x30] sm:$0xff]  ;;  %v735_v56 = vld [vmem:[#allocation18 + $0x28] sm:$0xff] }
 0x17f   :  { %v1391_v59 = vpop.f32.mrf.mxu0  ;;  %v1426_v60 = vpop.f32.mrf.mxu1 }
 0x180   :  { %v413_v61 = vadd.f32 %v1188_v57, %v403_v58  ;;  %v734_v57 = vld [vmem:[#allocation18 + $0x20] sm:$0xff]  ;;  %v733_v58 = vld [vmem:[#allocation18 + $0x18] sm:$0xff]  ;;  %v732_v59 = vld [vmem:[#allocation18 + $0x10] sm:$0xff] }
 0x181   :  { %v731_v60 = vld [vmem:[#allocation18 + $0x8] sm:$0xff] }
 0x182   :  { %v415_v62 = vmul.f32 1.442695, %v413_v61  ;;  %vm414_vm1 = vcmp.gt.f32.partialorder %v413_v61, 0.0 }
 0x184   :  { %1694 = vpow2.f32 %v415_v62  ;;  %v1192_v62 = vld [vmem:[%s2396_s9] ss:$0 sm:$0xff] }
 0x191   :  { %v1695_v63 = vpop.eup %1694 }
 0x192   :  { %v1189_v0 = vadd.f32 -1.0, %v1695_v63 }
 0x194   :  { %v418_v2 = vmul.f32 1.6732632, %v1189_v0 }
 0x196   :  { %v419_v3 = vsel %vm414_vm1, %v413_v61, %v418_v2  ;;  %v730_v61 = vld [vmem:[#allocation18] sm:$0xff] }
 0x197   :  { %v420_v4 = vmul.f32 1.050701, %v419_v3 }
 0x199   :  { %1460 = vmatmul.mubr.f32.vlgmr.msra.gmra.mxu0 %v420_v4 }
 0x19a   :  { %1529 = vmatprep.mubr.msk.f32.mxu0 %vm1999_vm0, %v1998_v1  ;;  %1498 = vmatpush3.msra.mxu0 %v636_v18  ;;  %v719_v18 = vld [vmem:[#allocation17 + $0x28] sm:$0xff] }
 0x19b   :  { %1499 = vmatprep.subr.mxu0 %v1998_v1 }
 0x19c   :  { %1500 = vmatpush3.msra.mxu0 %v635_v19  ;;  %v718_v19 = vld [vmem:[#allocation17 + $0x20] sm:$0xff] }
 0x19d   :  { %1501 = vmatprep.subr.mxu0 %v1998_v1 }
 0x19e   :  { %1502 = vmatpush3.msra.mxu0 %v634_v20  ;;  %v717_v20 = vld [vmem:[#allocation17 + $0x18] sm:$0xff] }
 0x19f   :  { %1503 = vmatprep.subr.mxu0 %v1998_v1 }
 0x1a0   :  { %1504 = vmatpush3.msra.mxu0 %v633_v31  ;;  %v910_v31 = vld [vmem:[#allocation20 + $0x48] sm:$0xff] }
 0x1a1   :  { %1505 = vmatprep.subr.mxu0 %v1998_v1 }
 0x1a2   :  { %1506 = vmatpush3.msra.mxu0 %v632_v32  ;;  %v909_v32 = vld [vmem:[#allocation20 + $0x40] sm:$0xff] }
 0x1a3   :  { %1507 = vmatprep.subr.mxu0 %v1998_v1 }
 0x1a4   :  { %1508 = vmatpush3.msra.mxu0 %v631_v33  ;;  %v908_v33 = vld [vmem:[#allocation20 + $0x38] sm:$0xff] }
 0x1a5   :  { %1509 = vmatprep.subr.mxu0 %v1998_v1 }
 0x1a6   :  { %1510 = vmatpush3.msra.mxu0 %v630_v36  ;;  %v907_v36 = vld [vmem:[#allocation20 + $0x30] sm:$0xff] }
 0x1a7   :  { %1511 = vmatprep.subr.mxu0 %v1998_v1 }
 0x1a8   :  { %1512 = vmatpush3.msra.mxu0 %v629_v37  ;;  %v906_v37 = vld [vmem:[#allocation20 + $0x28] sm:$0xff] }
 0x1a9   :  { %1513 = vmatprep.subr.mxu0 %v1998_v1 }
 0x1aa   :  { %1514 = vmatpush3.msra.mxu0 %v628_v38  ;;  %v905_v38 = vld [vmem:[#allocation20 + $0x20] sm:$0xff] }
 0x1ab   :  { %1515 = vmatprep.subr.mxu0 %v1998_v1 }
 0x1ac   :  { %1516 = vmatpush3.msra.mxu0 %v627_v39  ;;  %v904_v39 = vld [vmem:[#allocation20 + $0x18] sm:$0xff] }
 0x1ad   :  { %1517 = vmatprep.subr.mxu0 %v1998_v1 }
 0x1ae   :  { %1518 = vmatpush3.msra.mxu0 %v626_v40  ;;  %v903_v40 = vld [vmem:[#allocation20 + $0x10] sm:$0xff] }
 0x1af   :  { %1519 = vmatprep.subr.mxu0 %v1998_v1 }
 0x1b0   :  { %1520 = vmatpush3.msra.mxu0 %v625_v41  ;;  %v902_v41 = vld [vmem:[#allocation20 + $0x8] sm:$0xff] }
 0x1b1   :  { %1521 = vmatprep.subr.mxu0 %v1998_v1 }
 0x1b2   :  { %1522 = vmatpush3.msra.mxu0 %v624_v42  ;;  %v901_v42 = vld [vmem:[#allocation20] sm:$0xff] }
 0x1b3   :  { %1523 = vmatprep.subr.mxu0 %v1998_v1 }
 0x1b4   :  { %1524 = vmatpush3.msra.mxu0 %v623_v43  ;;  %v1016_v43 = vld [vmem:[#allocation21 + $0x78] sm:$0xff] }
 0x1b5   :  { %1525 = vmatprep.subr.mxu0 %v1998_v1 }
 0x1b6   :  { %1526 = vmatpush3.msra.mxu0 %v622_v44  ;;  %v1015_v44 = vld [vmem:[#allocation21 + $0x70] sm:$0xff] }
 0x1b7   :  { %1527 = vmatprep.subr.mxu0 %v1998_v1 }
 0x1b8   :  { %1528 = vmatpush3.msra.mxu0 %v621_v45  ;;  %v1014_v45 = vld [vmem:[#allocation21 + $0x68] sm:$0xff] }
 0x1b9   :  { %1567 = vmatprep.subr.mxu0 %v1998_v1 }
 0x259   :  { %v510_v22 = vpop.f32.mrf.mxu0 }
 0x25a   :  { %v511_v23 = vadd.f32 %v1190_v21, %v510_v22  ;;  %v716_v21 = vld [vmem:[#allocation17 + $0x10] sm:$0xff]  ;;  %v715_v22 = vld [vmem:[#allocation17 + $0x8] sm:$0xff] }
 0x25b   :  { %v1461_v24 = vpop.f32.mrf.mxu0 }
 0x25c   :  { %v515_v25 = vmul.f32 1.442695, %v511_v23  ;;  %vm514_vm2 = vcmp.gt.f32.partialorder %v511_v23, 0.0  ;;  %v916_v24 = vld [vmem:[#allocation20 + $0x78] sm:$0xff] }
 0x25e   :  { %1696 = vpow2.f32 %v515_v25  ;;  %v915_v25 = vld [vmem:[#allocation20 + $0x70] sm:$0xff] }
 0x26b   :  { %v1697_v26 = vpop.eup %1696 }
 0x26c   :  { %v1191_v27 = vadd.f32 -1.0, %v1697_v26 }
 0x26e   :  { %v518_v28 = vmul.f32 1.6732632, %v1191_v27 }
 0x270   :  { %v519_v29 = vsel %vm514_vm2, %v511_v23, %v518_v28  ;;  %v714_v23 = vld [vmem:[#allocation17] sm:$0xff]  ;;  %v914_v28 = vld [vmem:[#allocation20 + $0x68] sm:$0xff] }
 0x271   :  { %v520_v30 = vmul.f32 1.050701, %v519_v29  ;;  %v912_v29 = vld [vmem:[#allocation20 + $0x58] sm:$0xff] }
 0x273   :  { %1495 = vmatmul.mubr.f32.vlgmr.msra.gmra.mxu1 %v520_v30  ;;  %v911_v30 = vld [vmem:[#allocation20 + $0x50] sm:$0xff] }
 0x274   :  { %1564 = vmatprep.mubr.msk.f32.mxu1 %vm1999_vm0, %v1998_v1  ;;  %1533 = vmatpush3.msra.mxu1 %v745_v46 }
 0x275   :  { %1534 = vmatprep.subr.mxu1 %v1998_v1 }
 0x276   :  { %1535 = vmatpush3.msra.mxu1 %v744_v47 }
 0x277   :  { %1536 = vmatprep.subr.mxu1 %v1998_v1 }
 0x278   :  { %1537 = vmatpush3.msra.mxu1 %v743_v48 }
 0x279   :  { %1538 = vmatprep.subr.mxu1 %v1998_v1 }
 0x27a   :  { %1539 = vmatpush3.msra.mxu1 %v742_v49  ;;  %v1195_v49 = vld [vmem:[%s2401_s14] ss:$0 sm:$0xff] }
 0x27b   :  { %1540 = vmatprep.subr.mxu1 %v1998_v1 }
 0x27c   :  { %1541 = vmatpush3.msra.mxu1 %v741_v50 }
 0x27d   :  { %1542 = vmatprep.subr.mxu1 %v1998_v1 }
 0x27e   :  { %1543 = vmatpush3.msra.mxu1 %v740_v51 }
 0x27f   :  { %1544 = vmatprep.subr.mxu1 %v1998_v1 }
 0x280   :  { %1545 = vmatpush3.msra.mxu1 %v739_v52 }
 0x281   :  { %1546 = vmatprep.subr.mxu1 %v1998_v1 }
 0x282   :  { %1547 = vmatpush3.msra.mxu1 %v738_v53 }
 0x283   :  { %1548 = vmatprep.subr.mxu1 %v1998_v1 }
 0x284   :  { %1549 = vmatpush3.msra.mxu1 %v737_v54 }
 0x285   :  { %1550 = vmatprep.subr.mxu1 %v1998_v1 }
 0x286   :  { %1551 = vmatpush3.msra.mxu1 %v736_v55 }
 0x287   :  { %1552 = vmatprep.subr.mxu1 %v1998_v1 }
 0x288   :  { %1553 = vmatpush3.msra.mxu1 %v735_v56 }
 0x289   :  { %1554 = vmatprep.subr.mxu1 %v1998_v1 }
 0x28a   :  { %1555 = vmatpush3.msra.mxu1 %v734_v57 }
 0x28b   :  { %1556 = vmatprep.subr.mxu1 %v1998_v1 }
 0x28c   :  { %1557 = vmatpush3.msra.mxu1 %v733_v58 }
 0x28d   :  { %1558 = vmatprep.subr.mxu1 %v1998_v1 }
 0x28e   :  { %1559 = vmatpush3.msra.mxu1 %v732_v59  ;;  %v1013_v59 = vld [vmem:[#allocation21 + $0x60] sm:$0xff] }
 0x28f   :  { %1560 = vmatprep.subr.mxu1 %v1998_v1 }
 0x290   :  { %1561 = vmatpush3.msra.mxu1 %v731_v60  ;;  %v1012_v60 = vld [vmem:[#allocation21 + $0x58] sm:$0xff] }
 0x291   :  { %1562 = vmatprep.subr.mxu1 %v1998_v1 }
 0x292   :  { %1563 = vmatpush3.msra.mxu1 %v730_v61  ;;  %v1011_v61 = vld [vmem:[#allocation21 + $0x50] sm:$0xff] }
 0x293   :  { %1565 = vmatmul.mubr.f32.vlgmr.msra.gmra.mxu1 %v2217_v34  ;;  %1602 = vmatprep.subr.mxu1 %v1998_v1 }
 0x294   :  { %1634 = vmatprep.mubr.msk.f32.mxu1 %vm1999_vm0, %v1998_v1  ;;  %1603 = vmatpush3.msra.mxu1 %v916_v24 }
 0x295   :  { %1604 = vmatprep.subr.mxu1 %v1998_v1 }
 0x296   :  { %1605 = vmatpush3.msra.mxu1 %v915_v25 }
 0x297   :  { %1606 = vmatprep.subr.mxu1 %v1998_v1 }
 0x298   :  { %1607 = vmatpush3.msra.mxu1 %v914_v28 }
 0x299   :  { %1608 = vmatprep.subr.mxu1 %v1998_v1 }
 0x333   :  { %v610_v63 = vpop.f32.mrf.mxu1 }
 0x334   :  { %v611_v0 = vadd.f32 %v1192_v62, %v610_v63  ;;  %v1010_v62 = vld [vmem:[#allocation21 + $0x48] sm:$0xff]  ;;  %v1009_v63 = vld [vmem:[#allocation21 + $0x40] sm:$0xff] }
 0x335   :  { %v1496_v2 = vpop.f32.mrf.mxu1 }
 0x336   :  { %v615_v3 = vmul.f32 1.442695, %v611_v0  ;;  %vm614_vm3 = vcmp.gt.f32.partialorder %v611_v0, 0.0  ;;  %v1007_v2 = vld [vmem:[#allocation21 + $0x30] sm:$0xff] }
 0x338   :  { %1698 = vpow2.f32 %v615_v3  ;;  %v1006_v3 = vld [vmem:[#allocation21 + $0x28] sm:$0xff] }
 0x345   :  { %v1699_v4 = vpop.eup %1698 }
 0x346   :  { %v1193_v5 = vadd.f32 -1.0, %v1699_v4  ;;  %v1005_v4 = vld [vmem:[#allocation21 + $0x20] sm:$0xff] }
 0x348   :  { %v618_v6 = vmul.f32 1.6732632, %v1193_v5  ;;  %v1004_v5 = vld [vmem:[#allocation21 + $0x18] sm:$0xff] }
 0x34a   :  { %v619_v7 = vsel %vm614_vm3, %v611_v0, %v618_v6  ;;  %v1008_v0 = vld [vmem:[#allocation21 + $0x38] sm:$0xff]  ;;  %v1003_v6 = vld [vmem:[#allocation21 + $0x10] sm:$0xff] }
 0x34b   :  { %v620_v34 = vmul.f32 1.050701, %v619_v7  ;;  %v1002_v7 = vld [vmem:[#allocation21 + $0x8] sm:$0xff] }
 0x34d   :  { %1530 = vmatmul.mubr.f32.vlgmr.msra.gmra.mxu0 %v620_v34  ;;  %v1119_v34 = vld [vmem:[%s2408_s21] sm:$0x1] }
 0x34e   :  { %1568 = vmatpush3.msra.mxu0 %v729_v8  ;;  %1599 = vmatprep.mubr.msk.f32.mxu0 %vm1999_vm0, %v1998_v1  ;;  %v1001_v8 = vld [vmem:[#allocation21] sm:$0xff] }
 0x34f   :  { %1569 = vmatprep.subr.mxu0 %v1998_v1 }
 0x350   :  { %1570 = vmatpush3.msra.mxu0 %v728_v9  ;;  %v1120_v9 = vmul.f32 2.0, %v1119_v34 }
 0x351   :  { %1571 = vmatprep.subr.mxu0 %v1998_v1 }
 0x352   :  { %1572 = vmatpush3.msra.mxu0 %v727_v10  ;;  %v1132_v10 = vsel %vm1131_vm5, %v1120_v9, 0.0 }
 0x353   :  { %1573 = vmatprep.subr.mxu0 %v1998_v1  ;;  %v812_v26 = vpop.f32.mrf.mxu1  ;;  %1133 = vadd.xlane.f32.xlu0 %v1132_v10 }
 0x354   :  { %1574 = vmatpush3.msra.mxu0 %v726_v11  ;;  %v1197_v11 = vld [vmem:[%s2403_s16] ss:$0 sm:$0xff] }
 0x355   :  { %1575 = vmatprep.subr.mxu0 %v1998_v1  ;;  %v1566_v27 = vpop.f32.mrf.mxu1 }
 0x356   :  { %1576 = vmatpush3.msra.mxu0 %v725_v12 }
 0x357   :  { %1577 = vmatprep.subr.mxu0 %v1998_v1 }
 0x358   :  { %1578 = vmatpush3.msra.mxu0 %v724_v13 }
 0x359   :  { %1579 = vmatprep.subr.mxu0 %v1998_v1 }
 0x35a   :  { %1580 = vmatpush3.msra.mxu0 %v723_v14 }
 0x35b   :  { %1581 = vmatprep.subr.mxu0 %v1998_v1 }
 0x35c   :  { %1582 = vmatpush3.msra.mxu0 %v722_v15 }
 0x35d   :  { %1583 = vmatprep.subr.mxu0 %v1998_v1 }
 0x35e   :  { %1584 = vmatpush3.msra.mxu0 %v721_v16 }
 0x35f   :  { %1585 = vmatprep.subr.mxu0 %v1998_v1 }
 0x360   :  { %1586 = vmatpush3.msra.mxu0 %v720_v17 }
 0x361   :  { %1587 = vmatprep.subr.mxu0 %v1998_v1 }
 0x362   :  { %1588 = vmatpush3.msra.mxu0 %v719_v18 }
 0x363   :  { %1589 = vmatprep.subr.mxu0 %v1998_v1 }
 0x364   :  { %1590 = vmatpush3.msra.mxu0 %v718_v19 }
 0x365   :  { %1591 = vmatprep.subr.mxu0 %v1998_v1 }
 0x366   :  { %1592 = vmatpush3.msra.mxu0 %v717_v20  ;;  %v233_v20 = vld [vmem:[#allocation8] sm:$0xff] }
 0x367   :  { %1593 = vmatprep.subr.mxu0 %v1998_v1 }
 0x368   :  { %1594 = vmatpush3.msra.mxu0 %v716_v21  ;;  %v1144_v21 = vmul.f32 %v233_v20, %v233_v20 }
 0x369   :  { %1595 = vmatprep.subr.mxu0 %v1998_v1 }
 0x36a   :  { %1596 = vmatpush3.msra.mxu0 %v715_v22  ;;  %1145 = vadd.xlane.f32.xlu1 %v1144_v21 }
 0x36b   :  { %1597 = vmatprep.subr.mxu0 %v1998_v1 }
 0x36c   :  { %1598 = vmatpush3.msra.mxu0 %v714_v23 }
 0x36d   :  { %1600 = vmatmul.mubr.f32.vlgmr.msra.gmra.mxu0 %v2219_v35  ;;  %1637 = vmatprep.subr.mxu0 %v1998_v1  ;;  %v913_v35 = vld [vmem:[#allocation20 + $0x60] sm:$0xff] }
 0x36e   :  { %1669 = vmatprep.mubr.msk.f32.mxu0 %vm1999_vm0, %v1998_v1  ;;  %1609 = vmatpush3.msra.mxu1 %v913_v35  ;;  %v1199_v35 = vld [vmem:[%s2405_s18] ss:$0 sm:$0xff] }
 0x36f   :  { %1610 = vmatprep.subr.mxu1 %v1998_v1  ;;  %1638 = vmatpush3.msra.mxu0 %v1016_v43  ;;  %v1194_v43 = vld [vmem:[%s2398_s11] ss:$0 sm:$0xff]  ;;  %s2001_s11 = smov [#allocation23]  }
 0x370   :  { %1611 = vmatpush3.msra.mxu1 %v912_v29  ;;  %1639 = vmatprep.subr.mxu0 %v1998_v1 }
 0x371   :  { %1612 = vmatprep.subr.mxu1 %v1998_v1  ;;  %1640 = vmatpush3.msra.mxu0 %v1015_v44 }
 0x372   :  { %1613 = vmatpush3.msra.mxu1 %v911_v30  ;;  %1641 = vmatprep.subr.mxu0 %v1998_v1 }
 0x373   :  { %1614 = vmatprep.subr.mxu1 %v1998_v1  ;;  %1642 = vmatpush3.msra.mxu0 %v1014_v45  ;;  %v1202_v45 = vld [vmem:[#allocation2] ss:$0 sm:$0xff] }
 0x374   :  { %1615 = vmatpush3.msra.mxu1 %v910_v31  ;;  %1643 = vmatprep.subr.mxu0 %v1998_v1 }
 0x375   :  { %1616 = vmatprep.subr.mxu1 %v1998_v1  ;;  %1644 = vmatpush3.msra.mxu0 %v1013_v59 }
 0x376   :  { %1617 = vmatpush3.msra.mxu1 %v909_v32  ;;  %1645 = vmatprep.subr.mxu0 %v1998_v1 }
 0x377   :  { %1618 = vmatprep.subr.mxu1 %v1998_v1  ;;  %1646 = vmatpush3.msra.mxu0 %v1012_v60 }
 0x378   :  { %1619 = vmatpush3.msra.mxu1 %v908_v33  ;;  %1647 = vmatprep.subr.mxu0 %v1998_v1 }
 0x379   :  { %1620 = vmatprep.subr.mxu1 %v1998_v1  ;;  %1648 = vmatpush3.msra.mxu0 %v1011_v61 }
 0x37a   :  { %1621 = vmatpush3.msra.mxu1 %v907_v36  ;;  %1649 = vmatprep.subr.mxu0 %v1998_v1 }
 0x37b   :  { %1622 = vmatprep.subr.mxu1 %v1998_v1  ;;  %1650 = vmatpush3.msra.mxu0 %v1010_v62 }
 0x37c   :  { %1623 = vmatpush3.msra.mxu1 %v906_v37  ;;  %1651 = vmatprep.subr.mxu0 %v1998_v1 }
 0x37d   :  { %1624 = vmatprep.subr.mxu1 %v1998_v1  ;;  %1652 = vmatpush3.msra.mxu0 %v1009_v63 }
 0x37e   :  { %1625 = vmatpush3.msra.mxu1 %v905_v38  ;;  %1653 = vmatprep.subr.mxu0 %v1998_v1 }
 0x37f   :  { %1626 = vmatprep.subr.mxu1 %v1998_v1  ;;  %1654 = vmatpush3.msra.mxu0 %v1008_v0 }
 0x380   :  { %1627 = vmatpush3.msra.mxu1 %v904_v39  ;;  %1655 = vmatprep.subr.mxu0 %v1998_v1  ;;  %v1201_v39 = vld [vmem:[%s2406_s19] ss:$0 sm:$0xff] }
 0x381   :  { %1628 = vmatprep.subr.mxu1 %v1998_v1  ;;  %1656 = vmatpush3.msra.mxu0 %v1007_v2 }
 0x382   :  { %1629 = vmatpush3.msra.mxu1 %v903_v40  ;;  %1657 = vmatprep.subr.mxu0 %v1998_v1 }
 0x383   :  { %1630 = vmatprep.subr.mxu1 %v1998_v1  ;;  %1658 = vmatpush3.msra.mxu0 %v1006_v3 }
 0x384   :  { %1631 = vmatpush3.msra.mxu1 %v902_v41  ;;  %1659 = vmatprep.subr.mxu0 %v1998_v1 }
 0x385   :  { %1632 = vmatprep.subr.mxu1 %v1998_v1  ;;  %1660 = vmatpush3.msra.mxu0 %v1005_v4 }
 0x386   :  { %1633 = vmatpush3.msra.mxu1 %v901_v42  ;;  %1661 = vmatprep.subr.mxu0 %v1998_v1  ;;  %v2000_v42 = vmov 0  }
 0x387   :  { %1662 = vmatpush3.msra.mxu0 %v1004_v5  ;;  %1692 = vset.pattern.permute.xlu1 %v2000_v42 }
 0x388   :  { %1663 = vmatprep.subr.mxu0 %v1998_v1  ;;  %1693 = vset.pattern.permute.xlu0 %v2000_v42 }
 0x389   :  { %1664 = vmatpush3.msra.mxu0 %v1003_v6 }
 0x38a   :  { %1665 = vmatprep.subr.mxu0 %v1998_v1 }
 0x38b   :  { %1666 = vmatpush3.msra.mxu0 %v1002_v7 }
 0x38c   :  { %1667 = vmatprep.subr.mxu0 %v1998_v1 }
 0x38d   :  { %1668 = vmatpush3.msra.mxu0 %v1001_v8 }
 0x3dc   :  { %v1134_v22 = vpop.xlane.xlu0 %1133 }
 0x3dd   :  { %v1135_v23 = vrot.slane %v1134_v22, 4 }
 0x3df   :  { %v1136_v24 = vadd.f32 %v1135_v23, %v1134_v22 }
 0x3e1   :  { %v1137_v25 = vrot.slane %v1136_v24, 2 }
 0x40d   :  { %v2350_v46 = vpop.f32.mrf.mxu0 }
 0x40e   :  { %v711_v44 = vadd.f32 %v1194_v43, %v2350_v46 }
 0x40f   :  { %v1531_v47 = vpop.f32.mrf.mxu0 }
 0x42d   :  { %v882_v48 = vpop.f32.mrf.mxu0 }
 0x42e   :  { %v883_v50 = vadd.f32 %v882_v48, %v812_v26  ;;  %v1138_v26 = vadd.f32 %v1137_v25, %v1136_v24 }
 0x42f   :  { %v1601_v51 = vpop.f32.mrf.mxu0 }
 0x430   :  { %v893_v52 = vadd.f32 %v1195_v49, %v883_v50  ;;  %v1139_v27 = vrot.slane %v1138_v26, 1  ;;  %v1121_v49 = vmul.f32 1.442695, %v1120_v9  ;;  %v1124_v50 = vlaneseq }
 0x432   :  { %v895_v53 = vmul.f32 1.442695, %v893_v52  ;;  %vm894_vm4 = vcmp.gt.f32.partialorder %v893_v52, 0.0  ;;  %v1140_v28 = vadd.f32 %v1139_v27, %v1138_v26  ;;  %v1125_v51 = vshrl.u32 %v1124_v50, 7 }
 0x434   :  { %1700 = vpow2.f32 %v895_v53  ;;  %1672 = vpush %v1140_v28 }
 0x441   :  { %v1701_v54 = vpop.eup %1700 }
 0x442   :  { %v1196_v55 = vadd.f32 -1.0, %v1701_v54 }
 0x444   :  { %v898_v56 = vmul.f32 1.6732632, %v1196_v55  ;;  %v1146_v55 = vpop.xlane.xlu1 %1145 }
 0x446   :  { %v899_v57 = vsel %vm894_vm4, %v893_v52, %v898_v56  ;;  %v1126_v52 = vsub.s32 0, %v1125_v51  ;;  %v1147_v56 = vmul.f32 -0.5, %v1146_v55 }
 0x447   :  { %v900_v58 = vmul.f32 1.050701, %v899_v57 }
 0x449   :  { %1635 = vmatmul.mubr.f32.vlgmr.msra.gmra.mxu1 %v900_v58  ;;  %v1153_v58 = vand.u32 127, %v1124_v50 }
 0x44b   :  { %vm1155_vm8 = vcmp.eq.s32.totalorder %v1153_v58, 16  ;;  %vm1158_vm9 = vcmp.eq.s32.totalorder %v1153_v58, 17 }
 0x465   :  { %s1673_s19 = spop %1672 }
 0x466   :  { %s1142_s28 = ssub.f32 0.0, %s1673_s19 }
 0x468   :  { %s1203_s3 = sadd.f32 -7.351508, %s1142_s28 }
 0x46a   :  { %v1148_v46 = vstv %s1203_s3 }
 0x46b   :  { %v1149_v59 = vadd.f32 %v1148_v46, %v1147_v56 }
 0x46d   :  { %v1156_v63 = vsel %vm1155_vm8, %v1149_v59, 0.0 }
 0x509   :  { %v990_v12 = vpop.f32.mrf.mxu1 }
 0x50a   :  { %v991_v13 = vadd.f32 %v1197_v11, %v990_v12 }
 0x50b   :  { %v1636_v14 = vpop.f32.mrf.mxu1 }
 0x50c   :  { %v995_v15 = vmul.f32 1.442695, %v991_v13  ;;  %vm994_vm6 = vcmp.gt.f32.partialorder %v991_v13, 0.0 }
 0x50e   :  { %1702 = vpow2.f32 %v995_v15 }
 0x51b   :  { %v1703_v16 = vpop.eup %1702 }
 0x51c   :  { %v1198_v17 = vadd.f32 -1.0, %v1703_v16 }
 0x51e   :  { %v998_v18 = vmul.f32 1.6732632, %v1198_v17 }
 0x520   :  { %v999_v1 = vsel %vm994_vm6, %v991_v13, %v998_v18 }
 0x521   :  { %v1000_v19 = vmul.f32 1.050701, %v999_v1 }
 0x523   :  { %1670 = vmatmul.mubr.f32.vlgmr.msra.gmra.mxu0 %v1000_v19 }
 0x5e3   :  { %v1090_v29 = vpop.f32.mrf.mxu0 }
 0x5e4   :  { %v1091_v30 = vadd.f32 %v1199_v35, %v1090_v29 }
 0x5e5   :  { %v1671_v31 = vpop.f32.mrf.mxu0 }
 0x5e6   :  { %v1095_v32 = vmul.f32 1.442695, %v1091_v30  ;;  %vm1094_vm7 = vcmp.gt.f32.partialorder %v1091_v30, 0.0 }
 0x5e8   :  { %1704 = vpow2.f32 %v1095_v32 }
 0x5e9   :  { %1706 = vpow2.f32 %v1121_v49 }
 0x5f5   :  { %v1705_v33 = vpop.eup %1704 }
 0x5f6   :  { %v1200_v36 = vadd.f32 -1.0, %v1705_v33  ;;  %v1707_v53 = vpop.eup %1706 }
 0x5f7   :  { %v1127_v54 = vrot.slane %v1707_v53, %v1126_v52 }
 0x5f8   :  { %v1098_v37 = vmul.f32 1.6732632, %v1200_v36 }
 0x5f9   :  { %v1129_v57 = vmul.f32 %v1127_v54, %v233_v20 }
 0x5fa   :  { %v1099_v38 = vsel %vm1094_vm7, %v1091_v30, %v1098_v37 }
 0x5fb   :  { %v1100_v40 = vmul.f32 1.050701, %v1099_v38  ;;  %v1130_v61 = vadd.f32 %v1129_v57, %v711_v44 }
 0x5fd   :  { %v1108_v41 = vmul.f32 %v1201_v39, %v1100_v40 }
 0x5ff   :  { %1109 = vadd.xlane.f32.xlu0 %v1108_v41 }
 0x615   :  { %1150 = vrot.lane.b32.xlu0 %v711_v44, %s1987_s25  ;;  %s1173_s25 = sshll.u32 %s2001_s11, 4  ;;  %s1174_s25 = int_to_ptr.vmem [resolvable:$true] %s1173_s25 }
 0x616   :  { %s1948_s8 = scalar_lea.vmem %s1174_s25, 128  ;;  %p1953_p5 = scmp.lt.s32.totalorder %s1174_s25, %s1174_s25 }
 0x617   :  { %p1949_p4 = scmp.ne.s32.totalorder %s1174_s25, %s1948_s8  ;;  %p1954_p6 = scmp.lt.s32.totalorder %s1948_s8, %s1948_s8 }
 0x619   :  { %p1955_p7 = por %p1954_p6, %p1953_p5 }
 0x61b   :  { %p1956_p8 = pnand %p1955_p7, %p1949_p4 }
 0x688   :  { %v1110_v47 = vpop.xlane.xlu0 %1109 }
 0x689   :  { %v1118_v48 = vadd.f32 %v1202_v45, %v1110_v47 }
 0x68b   :  { %1161 = vperm.xlu1 %1692, %v1118_v48  }
 0x68c   :  { %v1151_v60 = vpop.permute.xlu0 %1150 }
 0x68d   :  { %v1154_v62 = vadd.f32 %v1151_v60, %v1130_v61 }
 0x68f   :  { %v1157_v0 = vadd.f32 %v1156_v63, %v1154_v62 }
 0x706   :  { %v1162_v2 = vpop.permute.xlu1 %1161 }
 0x707   :  { %v1164_v3 = vsel %vm1158_vm9, %v1162_v2, 0.0 }
 0x708   :  { %v1165_v4 = vadd.f32 %v1164_v3, %v1157_v0 }
 0x70a   :  { %1166 = vst [vmem:[#allocation23] sm:$0xff] %v1165_v4 }
 0x70b   :  { %1959 = shalt.err (!%p1956_p8)
}
 0x70c   :  { %1176 = dma.vmem_to_hbm [thread:$0]  %s1174_s25, 128, %s2409_s22, [#allocation5]  }
 0x70d   :  { %1982 = dma.done.wait [#allocation5], 128  }
 0x70e   :  { %1983 = vsyncadd [#allocation5], 4294967168 }
 0x70f   :  { %1180 = vsyncpa [#allocation4], 1 }
 0x710   :  { %1181 = vsyncpa [#allocation7], 1 }
 0x711   :  { %1182 = vsyncpa [#allocation10], 1 }
 0x712   :  { %1183 = vsyncpa [#allocation13], 1 }
 0x713   :  { %1184 = vsyncpa [#allocation16], 1 }
 0x714   :  { %1185 = vsyncpa [#allocation19], 1 }
 0x715   :  { %1186 = vsyncpa [#allocation22], 1 }
 0x716   :  { %1187 = vsyncpa [#allocation5], 1 }

</bundles_post_ra>
